<compile_context>
chip_gen: v5e
topology: v5e:2x2
jax: 0.10.0
libtpu: 0.0.40
codegen_flags: <defaults>
</compile_context>

<pallas_src>
import functools
import math

import jax
import jax.numpy as jnp
import numpy as np
from jax.experimental import pallas as pl
from jax.experimental.pallas import tpu as pltpu


# ---------------------------- Pallas kernel ----------------------------

def _layernorm_rows(y, g, b, eps=1e-5):
    mean = jnp.mean(y, axis=-1, keepdims=True)
    var = jnp.mean(jnp.square(y - mean), axis=-1, keepdims=True)
    return (y - mean) * jax.lax.rsqrt(var + eps) * g + b


def _fused_decoder_kernel(*refs, num_heads, head_dim, num_experts, top_k,
                          use_expand):
    """One grid step = (one batch block, one decoder layer).

    acc_ref (VMEM scratch, (Bb*S, D) f32) holds the running activations; it is
    initialised from the input embedding at layer 0 and stays resident across
    the 'arbitrary' layer axis.  Only the last token is emitted to HBM.
    """
    if use_expand:
        (x_ref, posb_ref, we_ref,
         wqkv_ref, bqkv_ref, wo_ref, bo_ref, ln1g_ref, ln1b_ref,
         wg_ref, bg_ref, w1_ref, b1_ref, w2_ref, b2_ref,
         ln2g_ref, ln2b_ref, expand_ref, o_ref, acc_ref) = refs
    else:
        (x_ref, posb_ref, we_ref,
         wqkv_ref, bqkv_ref, wo_ref, bo_ref, ln1g_ref, ln1b_ref,
         wg_ref, bg_ref, w1_ref, b1_ref, w2_ref, b2_ref,
         ln2g_ref, ln2b_ref, o_ref, acc_ref) = refs
        expand_ref = None

    bf16, f32 = jnp.bfloat16, jnp.float32
    layer = pl.program_id(1)
    bb, seq, din = x_ref.shape
    dm = we_ref.shape[1]
    rows = bb * seq
    hd = head_dim

    # ---- layer 0: input embedding + (positional encoding + embed bias) ----
    @pl.when(layer == 0)
    def _():
        x2 = x_ref[...].reshape(rows, din).astype(bf16)
        e = jnp.dot(x2, we_ref[...], preferred_element_type=f32)
        e = e.reshape(bb, seq, dm) + posb_ref[...][None]
        acc_ref[...] = e.reshape(rows, dm)

    h = acc_ref[...]                                  # (rows, D) f32, resident

    # ---- multi-head self-attention: fused QKV, per-head accumulated Wo ----
    wqkv = wqkv_ref[0]                                # (D, 3D) bf16
    wo = wo_ref[0]                                    # (D, D)  bf16
    qkv = (jnp.dot(h.astype(bf16), wqkv, preferred_element_type=f32)
           + bqkv_ref[0])                             # (rows, 3D) f32
    qkv3 = qkv.reshape(bb, seq, 3 * dm)
    scale = 1.0 / math.sqrt(hd)

    attn = jnp.zeros((rows, dm), f32)
    for hh in range(num_heads):
        lo = hh * hd
        q = qkv3[:, :, lo:lo + hd].astype(bf16)
        k = qkv3[:, :, dm + lo:dm + lo + hd].astype(bf16)
        v = qkv3[:, :, 2 * dm + lo:2 * dm + lo + hd].astype(bf16)
        # contracting-dim dot (no k.T materialization)
        s = jnp.einsum('bqd,bkd->bqk', q, k,
                       preferred_element_type=f32) * scale
        s = s - jnp.max(s, axis=-1, keepdims=True)
        p = jnp.exp(s)
        # exact divide (routing-parity with the test reference); production:
        # p = p * pl.reciprocal(jnp.sum(p, -1, keepdims=True), approx=True)
        p = p / jnp.sum(p, axis=-1, keepdims=True)
        ctx = jnp.einsum('bqk,bkd->bqd', p.astype(bf16), v,
                         preferred_element_type=f32)  # (Bb, S, hd)
        attn = attn + jnp.dot(ctx.reshape(rows, hd).astype(bf16),
                              wo[lo:lo + hd, :],
                              preferred_element_type=f32)
    attn = attn + bo_ref[0]

    h1 = _layernorm_rows(h + attn, ln1g_ref[0], ln1b_ref[0])   # residual + LN1

    # ---- MoE gating on the full (rows, E) logits slab (f32 for routing) ----
    logits = (jnp.dot(h1, wg_ref[0], preferred_element_type=f32)
              + bg_ref[0])                            # (rows, E)
    col = jax.lax.broadcasted_iota(jnp.int32, logits.shape, 1)
    rank = jnp.zeros(logits.shape, f32)
    for j in range(num_experts):                      # E slab-wide VPU passes
        vj = logits[:, j:j + 1]
        # expert j "beats" expert e if larger logit, or equal logit and lower
        # index (matches torch.topk tie-break).
        beats = (vj > logits) | ((vj == logits) & (j < col))
        rank = rank + beats.astype(f32)
    mask = rank < top_k                               # exactly top_k per row
    m = jnp.max(jnp.where(mask, logits, jnp.float32(-1e30)),
                axis=-1, keepdims=True)
    ex = jnp.where(mask, jnp.exp(logits - m), 0.0)
    gates = ex * pl.reciprocal(jnp.sum(ex, axis=-1, keepdims=True),
                               approx=True)          # (rows, E)

    # ---- fused expert FFN: relu(x @ W1cat) * gate -> W2cat ----
    hcat = jnp.maximum(
        jnp.dot(h1.astype(bf16), w1_ref[0], preferred_element_type=f32)
        + b1_ref[0], 0.0)                             # (rows, E*F)
    if use_expand:
        g_exp = jnp.dot(gates, expand_ref[...],
                        preferred_element_type=f32)   # (rows, E*F)
        scaled = hcat * g_exp
    else:
        ff = w1_ref.shape[-1] // num_experts          # F % 128 == 0 path
        scaled = (hcat.reshape(rows, num_experts, ff)
                  * gates[:, :, None]).reshape(rows, num_experts * ff)
    moe = (jnp.dot(scaled.astype(bf16), w2_ref[0],
                   preferred_element_type=f32)
           + jnp.dot(gates, b2_ref[0], preferred_element_type=f32))

    h2 = _layernorm_rows(h1 + moe, ln2g_ref[0], ln2b_ref[0])
    acc_ref[...] = h2

    # ---- only the last token ever leaves VMEM ----
    @pl.when(layer == pl.num_programs(1) - 1)
    def _():
        o_ref[...] = h2.reshape(bb, seq, dm)[:, seq - 1:seq, :]


# ------------------------------ wrapper ------------------------------

def _pick_batch_block(batch, seq, target_rows=256):
    """Smallest divisor Bb of batch with Bb*seq >= target_rows (else batch)."""
    for cand in range(1, batch + 1):
        if batch % cand == 0 and cand * seq >= target_rows:
            return cand
    return batch


def _pick_vmem_limit_bytes():
    try:
        cap = int(pltpu.get_tpu_info().vmem_capacity_bytes)
    except Exception:
        cap = 128 * 1024 * 1024
    # ~25% headroom for compiler scratch; never request more than 100 MiB.
    return max(32 * 1024 * 1024, min(cap * 3 // 4, 100 * 1024 * 1024))


def _pack_params(params, cfg):
    """Stack per-layer weights along a leading L axis in fused bf16 layouts."""
    D = cfg["model_dim"]
    E, F = cfg["num_experts"], cfg["dim_ff"]
    bf16 = jnp.bfloat16
    keys = ("wqkv", "bqkv", "wo", "bo", "ln1_g", "ln1_b",
            "wg", "bg", "w1", "b1", "w2", "b2", "ln2_g", "ln2_b")
    packed = {k: [] for k in keys}
    for lp in params["layers"]:
        wq = jnp.transpose(lp["wq"], (1, 0, 2)).reshape(D, D)
        wk = jnp.transpose(lp["wk"], (1, 0, 2)).reshape(D, D)
        wv = jnp.transpose(lp["wv"], (1, 0, 2)).reshape(D, D)
        packed["wqkv"].append(
            jnp.concatenate([wq, wk, wv], axis=1).astype(bf16))    # (D, 3D)
        packed["bqkv"].append(jnp.concatenate(
            [lp["bq"].reshape(1, D), lp["bk"].reshape(1, D),
             lp["bv"].reshape(1, D)], axis=1))                     # (1, 3D)
        packed["wo"].append(lp["wo"].reshape(D, D).astype(bf16))   # (D, D)
        packed["bo"].append(lp["bo"])
        packed["ln1_g"].append(lp["ln1_g"])
        packed["ln1_b"].append(lp["ln1_b"])
        packed["wg"].append(lp["wg"])                              # f32 (tiny)
        packed["bg"].append(lp["bg"])
        packed["w1"].append(jnp.transpose(lp["w1"], (1, 0, 2))
                            .reshape(D, E * F).astype(bf16))       # (D, EF)
        packed["b1"].append(lp["b1"].reshape(1, E * F))
        packed["w2"].append(lp["w2"].reshape(E * F, D).astype(bf16))
        packed["b2"].append(lp["b2"].reshape(E, D))                # (E, D)
        packed["ln2_g"].append(lp["ln2_g"])
        packed["ln2_b"].append(lp["ln2_b"])
    return {k: jnp.stack(v) for k, v in packed.items()}


def time_moe_decoder_forward(params, cfg, x, *, core_parallel=False):
    B, S, Din = x.shape
    D, H = cfg["model_dim"], cfg["num_heads"]
    E, F = cfg["num_experts"], cfg["dim_ff"]
    L = cfg["num_layers"]
    hd = D // H
    Bb = _pick_batch_block(B, S)               # fold rows -> MXU M = Bb*S
    use_expand = (F % 128 != 0)

    packed = _pack_params(params, cfg)
    we = params["embed_w"].astype(jnp.bfloat16)                     # (Din, D)
    # fold the embedding bias into the positional slab host-side
    pos_bias = (params["pos_emb"][:S] + params["embed_b"]).astype(jnp.float32)

    batch_blk = lambda bi, l: (bi, 0, 0)
    layer_blk = lambda bi, l: (l, 0, 0)
    const2 = lambda bi, l: (0, 0)

    in_specs = [
        pl.BlockSpec((Bb, S, Din), batch_blk),     # x (raw input)
        pl.BlockSpec((S, D), const2),              # pos + embed bias
        pl.BlockSpec((Din, D), const2),            # embed W (bf16)
        pl.BlockSpec((1, D, 3 * D), layer_blk),    # Wqkv (bf16)
        pl.BlockSpec((1, 1, 3 * D), layer_blk),    # bqkv
        pl.BlockSpec((1, D, D), layer_blk),        # Wo (bf16)
        pl.BlockSpec((1, 1, D), layer_blk),        # bo
        pl.BlockSpec((1, 1, D), layer_blk),        # ln1 gamma
        pl.BlockSpec((1, 1, D), layer_blk),        # ln1 beta
        pl.BlockSpec((1, D, E), layer_blk),        # gate W (f32)
        pl.BlockSpec((1, 1, E), layer_blk),        # gate b
        pl.BlockSpec((1, D, E * F), layer_blk),    # W1cat (bf16)
        pl.BlockSpec((1, 1, E * F), layer_blk),    # b1cat
        pl.BlockSpec((1, E * F, D), layer_blk),    # W2cat (bf16)
        pl.BlockSpec((1, E, D), layer_blk),        # b2 matrix
        pl.BlockSpec((1, 1, D), layer_blk),        # ln2 gamma
        pl.BlockSpec((1, 1, D), layer_blk),        # ln2 beta
    ]
    args = [x, pos_bias, we,
            packed["wqkv"], packed["bqkv"], packed["wo"], packed["bo"],
            packed["ln1_g"], packed["ln1_b"],
            packed["wg"], packed["bg"], packed["w1"], packed["b1"],
            packed["w2"], packed["b2"], packed["ln2_g"], packed["ln2_b"]]
    if use_expand:
        # gate-expansion constant: expand[e, e*F + f] = 1 (F not lane-aligned)
        expand = jnp.repeat(jnp.eye(E, dtype=jnp.float32), F, axis=1)
        in_specs.append(pl.BlockSpec((E, E * F), const2))
        args.append(expand)

    # on v7x, pass core_parallel=True (with B // Bb >= 2) to split batch
    # blocks across the two TensorCores.
    batch_sem = pltpu.CORE_PARALLEL if core_parallel else "parallel"

    last = pl.pallas_call(
        functools.partial(_fused_decoder_kernel, num_heads=H, head_dim=hd,
                          num_experts=E, top_k=cfg["top_k"],
                          use_expand=use_expand),
        out_shape=jax.ShapeDtypeStruct((B, 1, D), jnp.float32),
        grid=(B // Bb, L),
        in_specs=in_specs,
        out_specs=pl.BlockSpec((Bb, 1, D), batch_blk),
        scratch_shapes=[pltpu.VMEM((Bb * S, D), jnp.float32)],
        compiler_params=pltpu.CompilerParams(
            dimension_semantics=(batch_sem, "arbitrary"),
            vmem_limit_bytes=_pick_vmem_limit_bytes()),
    )(*args)

    # Output head (D -> 1) intentionally left to XLA: lane-width-1 output and
    # per-call overhead make a dedicated pallas_call strictly slower.
    last = last[:, 0, :]                                            # [B, D]
    return (last @ params["head_w"] + params["head_b"])[:, 0]       # [B]


# ----------------------- pure-JAX reference -----------------------
# Mirrors the PyTorch forward math; uses the SAME bf16-quantized weights and
# the same bf16 cast points as the kernel so the comparison is tight and the
# top-k expert routing cannot tie-flip between kernel and reference.

def _layernorm(y, g, b, eps=1e-5):
    mean = jnp.mean(y, axis=-1, keepdims=True)
    var = jnp.mean((y - mean) ** 2, axis=-1, keepdims=True)
    return (y - mean) / jnp.sqrt(var + eps) * g + b


def reference_forward(params, cfg, x):
    bf, f32 = jnp.bfloat16, jnp.float32
    B, S, Din = x.shape
    D, H = cfg["model_dim"], cfg["num_heads"]
    hd = D // H
    E = cfg["num_experts"]
    h = (jnp.dot(x.reshape(-1, Din).astype(bf), params["embed_w"].astype(bf),
                 preferred_element_type=f32).reshape(B, S, D)
         + params["embed_b"] + params["pos_emb"][:S][None])
    for lp in params["layers"]:
        hb = h.astype(bf)
        q = jnp.einsum("bsd,hdk->bhsk", hb, lp["wq"].astype(bf),
                       preferred_element_type=f32) + lp["bq"][None]
        k = jnp.einsum("bsd,hdk->bhsk", hb, lp["wk"].astype(bf),
                       preferred_element_type=f32) + lp["bk"][None]
        v = jnp.einsum("bsd,hdk->bhsk", hb, lp["wv"].astype(bf),
                       preferred_element_type=f32) + lp["bv"][None]
        s = jnp.einsum("bhsk,bhtk->bhst", q.astype(bf), k.astype(bf),
                       preferred_element_type=f32) / jnp.sqrt(jnp.float32(hd))
        p = jax.nn.softmax(s, axis=-1)
        o = jnp.einsum("bhst,bhtk->bhsk", p.astype(bf), v.astype(bf),
                       preferred_element_type=f32)
        attn = jnp.einsum("bhsk,hkd->bsd", o.astype(bf), lp["wo"].astype(bf),
                          preferred_element_type=f32) + lp["bo"]
        h = _layernorm(h + attn, lp["ln1_g"], lp["ln1_b"])

        hf = h.reshape(-1, D)
        logits = hf @ lp["wg"] + lp["bg"]                 # f32 routing
        topv, topi = jax.lax.top_k(logits, cfg["top_k"])
        w = jax.nn.softmax(topv, axis=-1)
        dense_w = jnp.zeros_like(logits)
        dense_w = dense_w.at[jnp.arange(hf.shape[0])[:, None], topi].set(w)
        out = jnp.zeros_like(hf)
        for e in range(E):
            he = jnp.maximum(
                jnp.dot(hf.astype(bf), lp["w1"][e].astype(bf),
                        preferred_element_type=f32) + lp["b1"][e], 0.0)
            ge = dense_w[:, e:e + 1]
            # gate applied before the W2 matmul (mathematically identical to
            # PyTorch's post-scaling; matches the kernel's bf16 cast point)
            ye = jnp.dot((ge * he).astype(bf), lp["w2"][e].astype(bf),
                         preferred_element_type=f32) + ge * lp["b2"][e]
            out = out + ye
        hf = _layernorm(hf + out, lp["ln2_g"], lp["ln2_b"])
        h = hf.reshape(B, S, D)
    last = h[:, -1, :]
    return (last @ params["head_w"] + params["head_b"])[:, 0]


# ----------------------- deterministic params -----------------------

def init_params(key, cfg):
    D, Din, F = cfg["model_dim"], cfg["input_dim"], cfg["dim_ff"]
    E, L, H = cfg["num_experts"], cfg["num_layers"], cfg["num_heads"]
    hd = D // H

    def nxt():
        nonlocal key
        key, sub = jax.random.split(key)
        return sub

    def w(shape, scale=0.1):
        return (scale * jax.random.normal(nxt(), shape)).astype(jnp.float32)

    params = {
        "embed_w": w((Din, D)),
        "embed_b": w((1, D)),
        "pos_emb": w((5000, D), scale=0.02),
        "head_w": w((D, 1)),
        "head_b": w((1, 1)),
        "layers": [],
    }
    for _ in range(L):
        params["layers"].append({
            "wq": w((H, D, hd)), "wk": w((H, D, hd)), "wv": w((H, D, hd)),
            "wo": w((H, hd, D)),
            "bq": w((H, 1, hd)), "bk": w((H, 1, hd)), "bv": w((H, 1, hd)),
            "bo": w((1, D)),
            "ln1_g": jnp.ones((1, D), jnp.float32),
            "ln1_b": jnp.zeros((1, D), jnp.float32),
            "wg": w((D, E)), "bg": w((1, E)),
            "w1": w((E, D, F)), "b1": w((E, 1, F)),
            "w2": w((E, F, D)), "b2": w((E, 1, D)),
            "ln2_g": jnp.ones((1, D), jnp.float32),
            "ln2_b": jnp.zeros((1, D), jnp.float32),
        })
    return params


if __name__ == "__main__":
    cfg = dict(input_dim=4, model_dim=32, num_heads=4, num_layers=2,
               dim_ff=64, num_experts=4, top_k=2)
    key = jax.random.PRNGKey(0)
    pkey, xkey = jax.random.split(key)
    params = init_params(pkey, cfg)

    B, S = 2, 8
    tgt = jax.random.normal(xkey, (B, S, cfg["input_dim"]), dtype=jnp.float32)

    out = time_moe_decoder_forward(params, cfg, tgt)
    out = jax.block_until_ready(out)

    ref = reference_forward(params, cfg, tgt)
    # tolerance covers MXU accumulation-order / approx-reciprocal effects
    # (both paths use the same bf16-quantized weights, so no routing flips).
    np.testing.assert_allclose(np.asarray(out), np.asarray(ref),
                               rtol=2e-3, atol=2e-3)
    print("KERNEL_OK")
</pallas_src>

<mosaic_0001>
module attributes {stable_mosaic.version = 11 : i64} {
  func.func @_fused_decoder_kernel(%arg0: i32, %arg1: i32, %arg2: memref<2x8x4xf32, #tpu.memory_space<vmem>>, %arg3: memref<8x32xf32, #tpu.memory_space<vmem>>, %arg4: memref<4x32xbf16, #tpu.memory_space<vmem>>, %arg5: memref<1x32x96xbf16, #tpu.memory_space<vmem>>, %arg6: memref<1x1x96xf32, #tpu.memory_space<vmem>>, %arg7: memref<1x32x32xbf16, #tpu.memory_space<vmem>>, %arg8: memref<1x1x32xf32, #tpu.memory_space<vmem>>, %arg9: memref<1x1x32xf32, #tpu.memory_space<vmem>>, %arg10: memref<1x1x32xf32, #tpu.memory_space<vmem>>, %arg11: memref<1x32x4xf32, #tpu.memory_space<vmem>>, %arg12: memref<1x1x4xf32, #tpu.memory_space<vmem>>, %arg13: memref<1x32x256xbf16, #tpu.memory_space<vmem>>, %arg14: memref<1x1x256xf32, #tpu.memory_space<vmem>>, %arg15: memref<1x256x32xbf16, #tpu.memory_space<vmem>>, %arg16: memref<1x4x32xf32, #tpu.memory_space<vmem>>, %arg17: memref<1x1x32xf32, #tpu.memory_space<vmem>>, %arg18: memref<1x1x32xf32, #tpu.memory_space<vmem>>, %arg19: memref<4x256xf32, #tpu.memory_space<vmem>>, %arg20: memref<2x1x32xf32, #tpu.memory_space<vmem>>, %arg21: memref<16x32xf32, #tpu.memory_space<vmem>>) attributes {dimension_semantics = [#tpu.dimension_semantics<parallel>, #tpu.dimension_semantics<arbitrary>], iteration_bounds = array<i64: 1, 2>, scalar_prefetch = 0 : i64, scratch_operands = 1 : i64, tpu.core_type = #tpu.core_type<tc>, window_params = [{transform_indices = @transform_0, window_bounds = array<i64: 2, 8, 4>}, {pipeline_mode = #tpu.pipeline_mode<synchronous>, transform_indices = @transform_1, window_bounds = array<i64: 8, 32>}, {pipeline_mode = #tpu.pipeline_mode<synchronous>, transform_indices = @transform_2, window_bounds = array<i64: 4, 32>}, {transform_indices = @transform_3, window_bounds = array<i64: 1, 32, 96>}, {transform_indices = @transform_4, window_bounds = array<i64: 1, 1, 96>}, {transform_indices = @transform_5, window_bounds = array<i64: 1, 32, 32>}, {transform_indices = @transform_6, window_bounds = array<i64: 1, 1, 32>}, {transform_indices = @transform_7, window_bounds = array<i64: 1, 1, 32>}, {transform_indices = @transform_8, window_bounds = array<i64: 1, 1, 32>}, {transform_indices = @transform_9, window_bounds = array<i64: 1, 32, 4>}, {transform_indices = @transform_10, window_bounds = array<i64: 1, 1, 4>}, {transform_indices = @transform_11, window_bounds = array<i64: 1, 32, 256>}, {transform_indices = @transform_12, window_bounds = array<i64: 1, 1, 256>}, {transform_indices = @transform_13, window_bounds = array<i64: 1, 256, 32>}, {transform_indices = @transform_14, window_bounds = array<i64: 1, 4, 32>}, {transform_indices = @transform_15, window_bounds = array<i64: 1, 1, 32>}, {transform_indices = @transform_16, window_bounds = array<i64: 1, 1, 32>}, {pipeline_mode = #tpu.pipeline_mode<synchronous>, transform_indices = @transform_17, window_bounds = array<i64: 4, 256>}, {transform_indices = @transform_18, window_bounds = array<i64: 2, 1, 32>}]} {
    %c0_i32 = arith.constant 0 : i32
    %0 = arith.cmpi eq, %arg1, %c0_i32 : i32
    %1 = arith.extui %0 : i1 to i32
    %c0_i32_0 = arith.constant 0 : i32
    %2 = arith.cmpi ne, %1, %c0_i32_0 : i32
    scf.if %2 {
      %c0_98 = arith.constant 0 : index
      %c0_99 = arith.constant 0 : index
      %c0_100 = arith.constant 0 : index
      %272 = vector.load %arg2[%c0_98, %c0_99, %c0_100] : memref<2x8x4xf32, #tpu.memory_space<vmem>>, vector<2x8x4xf32>
      %273 = vector.shape_cast %272 : vector<2x8x4xf32> to vector<16x4xf32>
      %274 = arith.truncf %273 : vector<16x4xf32> to vector<16x4xbf16>
      %c0_101 = arith.constant 0 : index
      %c0_102 = arith.constant 0 : index
      %275 = vector.load %arg4[%c0_101, %c0_102] : memref<4x32xbf16, #tpu.memory_space<vmem>>, vector<4x32xbf16>
      %cst_103 = arith.constant dense<0.000000e+00> : vector<16x32xf32>
      %276 = tpu.matmul %274, %275, %cst_103 {dimension_numbers = #tpu.dot_dimension_numbers<[1], [0], [0], [1], [0, 0, 1, 1], [], []>} : vector<16x4xbf16>, vector<4x32xbf16>, vector<16x32xf32> -> vector<16x32xf32>
      %277 = vector.shape_cast %276 : vector<16x32xf32> to vector<2x8x32xf32>
      %c0_104 = arith.constant 0 : index
      %c0_105 = arith.constant 0 : index
      %278 = vector.load %arg3[%c0_104, %c0_105] : memref<8x32xf32, #tpu.memory_space<vmem>>, vector<8x32xf32>
      %279 = vector.shape_cast %278 : vector<8x32xf32> to vector<1x8x32xf32>
      %280 = vector.broadcast %279 : vector<1x8x32xf32> to vector<2x8x32xf32>
      %281 = arith.addf %277, %280 : vector<2x8x32xf32>
      %282 = vector.shape_cast %281 : vector<2x8x32xf32> to vector<16x32xf32>
      %c0_106 = arith.constant 0 : index
      %c0_107 = arith.constant 0 : index
      %283 = vector.load %arg21[%c0_106, %c0_107] : memref<16x32xf32, #tpu.memory_space<vmem>>, vector<16x32xf32>
      tpu.vector_store %arg21[%c0_106, %c0_107], %282 {strides = array<i32>} : memref<16x32xf32, #tpu.memory_space<vmem>>, vector<16x32xf32>,
    } else {
    }
    %c0 = arith.constant 0 : index
    %c0_1 = arith.constant 0 : index
    %3 = vector.load %arg21[%c0, %c0_1] : memref<16x32xf32, #tpu.memory_space<vmem>>, vector<16x32xf32>
    %c0_2 = arith.constant 0 : index
    %c0_3 = arith.constant 0 : index
    %c0_4 = arith.constant 0 : index
    %4 = vector.load %arg5[%c0_2, %c0_3, %c0_4] : memref<1x32x96xbf16, #tpu.memory_space<vmem>>, vector<1x32x96xbf16>
    %5 = vector.shape_cast %4 : vector<1x32x96xbf16> to vector<32x96xbf16>
    %c0_5 = arith.constant 0 : index
    %c0_6 = arith.constant 0 : index
    %c0_7 = arith.constant 0 : index
    %6 = vector.load %arg7[%c0_5, %c0_6, %c0_7] : memref<1x32x32xbf16, #tpu.memory_space<vmem>>, vector<1x32x32xbf16>
    %7 = vector.shape_cast %6 : vector<1x32x32xbf16> to vector<32x32xbf16>
    %8 = arith.truncf %3 : vector<16x32xf32> to vector<16x32xbf16>
    %cst = arith.constant dense<0.000000e+00> : vector<16x96xf32>
    %9 = tpu.matmul %8, %5, %cst {dimension_numbers = #tpu.dot_dimension_numbers<[1], [0], [0], [1], [0, 0, 1, 1], [], []>} : vector<16x32xbf16>, vector<32x96xbf16>, vector<16x96xf32> -> vector<16x96xf32>
    %c0_8 = arith.constant 0 : index
    %c0_9 = arith.constant 0 : index
    %c0_10 = arith.constant 0 : index
    %10 = vector.load %arg6[%c0_8, %c0_9, %c0_10] : memref<1x1x96xf32, #tpu.memory_space<vmem>>, vector<1x1x96xf32>
    %11 = vector.shape_cast %10 : vector<1x1x96xf32> to vector<1x96xf32>
    %12 = vector.broadcast %11 : vector<1x96xf32> to vector<16x96xf32>
    %13 = arith.addf %9, %12 : vector<16x96xf32>
    %14 = vector.shape_cast %13 : vector<16x96xf32> to vector<2x8x96xf32>
    %cst_11 = arith.constant 0.000000e+00 : f32
    %15 = vector.broadcast %cst_11 : f32 to vector<16x32xf32>
    %16 = vector.extract_strided_slice %14 {offsets = [0, 0, 0], sizes = [2, 8, 8], strides = [1, 1, 1]} : vector<2x8x96xf32> to vector<2x8x8xf32>
    %17 = arith.truncf %16 : vector<2x8x8xf32> to vector<2x8x8xbf16>
    %18 = vector.extract_strided_slice %14 {offsets = [0, 0, 32], sizes = [2, 8, 8], strides = [1, 1, 1]} : vector<2x8x96xf32> to vector<2x8x8xf32>
    %19 = arith.truncf %18 : vector<2x8x8xf32> to vector<2x8x8xbf16>
    %20 = vector.extract_strided_slice %14 {offsets = [0, 0, 64], sizes = [2, 8, 8], strides = [1, 1, 1]} : vector<2x8x96xf32> to vector<2x8x8xf32>
    %21 = arith.truncf %20 : vector<2x8x8xf32> to vector<2x8x8xbf16>
    "tpu.trace_start"() <{level = 10 : i32, message = "bqd,bkd->bqk"}> : () -> ()
    %cst_12 = arith.constant dense<0.000000e+00> : vector<2x8x8xf32>
    %22 = tpu.matmul %17, %19, %cst_12 {dimension_numbers = #tpu.dot_dimension_numbers<[2], [2], [1], [1], [0, 0, 0, 1, 1, 1], [0], [0]>} : vector<2x8x8xbf16>, vector<2x8x8xbf16>, vector<2x8x8xf32> -> vector<2x8x8xf32>
    "tpu.trace_stop"() : () -> ()
    %cst_13 = arith.constant 0.353553385 : f32
    %23 = vector.broadcast %cst_13 : f32 to vector<2x8x8xf32>
    %24 = arith.mulf %22, %23 : vector<2x8x8xf32>
    %cst_14 = arith.constant dense<0xFF800000> : vector<2x8xf32>
    %25 = vector.multi_reduction <maximumf>, %24, %cst_14 [2] : vector<2x8x8xf32> to vector<2x8xf32>
    %26 = vector.shape_cast %25 : vector<2x8xf32> to vector<2x8x1xf32>
    %27 = vector.broadcast %26 : vector<2x8x1xf32> to vector<2x8x8xf32>
    %28 = arith.subf %24, %27 : vector<2x8x8xf32>
    %29 = math.exp %28 : vector<2x8x8xf32>
    %cst_15 = arith.constant dense<0.000000e+00> : vector<2x8xf32>
    %30 = vector.multi_reduction <add>, %29, %cst_15 [2] : vector<2x8x8xf32> to vector<2x8xf32>
    %31 = vector.shape_cast %30 : vector<2x8xf32> to vector<2x8x1xf32>
    %32 = vector.broadcast %31 : vector<2x8x1xf32> to vector<2x8x8xf32>
    %33 = arith.divf %29, %32 : vector<2x8x8xf32>
    %34 = arith.truncf %33 : vector<2x8x8xf32> to vector<2x8x8xbf16>
    "tpu.trace_start"() <{level = 10 : i32, message = "bqk,bkd->bqd"}> : () -> ()
    %cst_16 = arith.constant dense<0.000000e+00> : vector<2x8x8xf32>
    %35 = tpu.matmul %34, %21, %cst_16 {dimension_numbers = #tpu.dot_dimension_numbers<[2], [1], [1], [2], [0, 0, 0, 1, 1, 2], [0], [0]>} : vector<2x8x8xbf16>, vector<2x8x8xbf16>, vector<2x8x8xf32> -> vector<2x8x8xf32>
    "tpu.trace_stop"() : () -> ()
    %36 = vector.shape_cast %35 : vector<2x8x8xf32> to vector<16x8xf32>
    %37 = arith.truncf %36 : vector<16x8xf32> to vector<16x8xbf16>
    %38 = vector.extract_strided_slice %7 {offsets = [0, 0], sizes = [8, 32], strides = [1, 1]} : vector<32x32xbf16> to vector<8x32xbf16>
    %cst_17 = arith.constant dense<0.000000e+00> : vector<16x32xf32>
    %39 = tpu.matmul %37, %38, %cst_17 {dimension_numbers = #tpu.dot_dimension_numbers<[1], [0], [0], [1], [0, 0, 1, 1], [], []>} : vector<16x8xbf16>, vector<8x32xbf16>, vector<16x32xf32> -> vector<16x32xf32>
    %40 = arith.addf %15, %39 : vector<16x32xf32>
    %41 = vector.extract_strided_slice %14 {offsets = [0, 0, 8], sizes = [2, 8, 8], strides = [1, 1, 1]} : vector<2x8x96xf32> to vector<2x8x8xf32>
    %42 = arith.truncf %41 : vector<2x8x8xf32> to vector<2x8x8xbf16>
    %43 = vector.extract_strided_slice %14 {offsets = [0, 0, 40], sizes = [2, 8, 8], strides = [1, 1, 1]} : vector<2x8x96xf32> to vector<2x8x8xf32>
    %44 = arith.truncf %43 : vector<2x8x8xf32> to vector<2x8x8xbf16>
    %45 = vector.extract_strided_slice %14 {offsets = [0, 0, 72], sizes = [2, 8, 8], strides = [1, 1, 1]} : vector<2x8x96xf32> to vector<2x8x8xf32>
    %46 = arith.truncf %45 : vector<2x8x8xf32> to vector<2x8x8xbf16>
    "tpu.trace_start"() <{level = 10 : i32, message = "bqd,bkd->bqk"}> : () -> ()
    %cst_18 = arith.constant dense<0.000000e+00> : vector<2x8x8xf32>
    %47 = tpu.matmul %42, %44, %cst_18 {dimension_numbers = #tpu.dot_dimension_numbers<[2], [2], [1], [1], [0, 0, 0, 1, 1, 1], [0], [0]>} : vector<2x8x8xbf16>, vector<2x8x8xbf16>, vector<2x8x8xf32> -> vector<2x8x8xf32>
    "tpu.trace_stop"() : () -> ()
    %cst_19 = arith.constant 0.353553385 : f32
    %48 = vector.broadcast %cst_19 : f32 to vector<2x8x8xf32>
    %49 = arith.mulf %47, %48 : vector<2x8x8xf32>
    %cst_20 = arith.constant dense<0xFF800000> : vector<2x8xf32>
    %50 = vector.multi_reduction <maximumf>, %49, %cst_20 [2] : vector<2x8x8xf32> to vector<2x8xf32>
    %51 = vector.shape_cast %50 : vector<2x8xf32> to vector<2x8x1xf32>
    %52 = vector.broadcast %51 : vector<2x8x1xf32> to vector<2x8x8xf32>
    %53 = arith.subf %49, %52 : vector<2x8x8xf32>
    %54 = math.exp %53 : vector<2x8x8xf32>
    %cst_21 = arith.constant dense<0.000000e+00> : vector<2x8xf32>
    %55 = vector.multi_reduction <add>, %54, %cst_21 [2] : vector<2x8x8xf32> to vector<2x8xf32>
    %56 = vector.shape_cast %55 : vector<2x8xf32> to vector<2x8x1xf32>
    %57 = vector.broadcast %56 : vector<2x8x1xf32> to vector<2x8x8xf32>
    %58 = arith.divf %54, %57 : vector<2x8x8xf32>
    %59 = arith.truncf %58 : vector<2x8x8xf32> to vector<2x8x8xbf16>
    "tpu.trace_start"() <{level = 10 : i32, message = "bqk,bkd->bqd"}> : () -> ()
    %cst_22 = arith.constant dense<0.000000e+00> : vector<2x8x8xf32>
    %60 = tpu.matmul %59, %46, %cst_22 {dimension_numbers = #tpu.dot_dimension_numbers<[2], [1], [1], [2], [0, 0, 0, 1, 1, 2], [0], [0]>} : vector<2x8x8xbf16>, vector<2x8x8xbf16>, vector<2x8x8xf32> -> vector<2x8x8xf32>
    "tpu.trace_stop"() : () -> ()
    %61 = vector.shape_cast %60 : vector<2x8x8xf32> to vector<16x8xf32>
    %62 = arith.truncf %61 : vector<16x8xf32> to vector<16x8xbf16>
    %63 = vector.extract_strided_slice %7 {offsets = [8, 0], sizes = [8, 32], strides = [1, 1]} : vector<32x32xbf16> to vector<8x32xbf16>
    %cst_23 = arith.constant dense<0.000000e+00> : vector<16x32xf32>
    %64 = tpu.matmul %62, %63, %cst_23 {dimension_numbers = #tpu.dot_dimension_numbers<[1], [0], [0], [1], [0, 0, 1, 1], [], []>} : vector<16x8xbf16>, vector<8x32xbf16>, vector<16x32xf32> -> vector<16x32xf32>
    %65 = arith.addf %40, %64 : vector<16x32xf32>
    %66 = vector.extract_strided_slice %14 {offsets = [0, 0, 16], sizes = [2, 8, 8], strides = [1, 1, 1]} : vector<2x8x96xf32> to vector<2x8x8xf32>
    %67 = arith.truncf %66 : vector<2x8x8xf32> to vector<2x8x8xbf16>
    %68 = vector.extract_strided_slice %14 {offsets = [0, 0, 48], sizes = [2, 8, 8], strides = [1, 1, 1]} : vector<2x8x96xf32> to vector<2x8x8xf32>
    %69 = arith.truncf %68 : vector<2x8x8xf32> to vector<2x8x8xbf16>
    %70 = vector.extract_strided_slice %14 {offsets = [0, 0, 80], sizes = [2, 8, 8], strides = [1, 1, 1]} : vector<2x8x96xf32> to vector<2x8x8xf32>
    %71 = arith.truncf %70 : vector<2x8x8xf32> to vector<2x8x8xbf16>
    "tpu.trace_start"() <{level = 10 : i32, message = "bqd,bkd->bqk"}> : () -> ()
    %cst_24 = arith.constant dense<0.000000e+00> : vector<2x8x8xf32>
    %72 = tpu.matmul %67, %69, %cst_24 {dimension_numbers = #tpu.dot_dimension_numbers<[2], [2], [1], [1], [0, 0, 0, 1, 1, 1], [0], [0]>} : vector<2x8x8xbf16>, vector<2x8x8xbf16>, vector<2x8x8xf32> -> vector<2x8x8xf32>
    "tpu.trace_stop"() : () -> ()
    %cst_25 = arith.constant 0.353553385 : f32
    %73 = vector.broadcast %cst_25 : f32 to vector<2x8x8xf32>
    %74 = arith.mulf %72, %73 : vector<2x8x8xf32>
    %cst_26 = arith.constant dense<0xFF800000> : vector<2x8xf32>
    %75 = vector.multi_reduction <maximumf>, %74, %cst_26 [2] : vector<2x8x8xf32> to vector<2x8xf32>
    %76 = vector.shape_cast %75 : vector<2x8xf32> to vector<2x8x1xf32>
    %77 = vector.broadcast %76 : vector<2x8x1xf32> to vector<2x8x8xf32>
    %78 = arith.subf %74, %77 : vector<2x8x8xf32>
    %79 = math.exp %78 : vector<2x8x8xf32>
    %cst_27 = arith.constant dense<0.000000e+00> : vector<2x8xf32>
    %80 = vector.multi_reduction <add>, %79, %cst_27 [2] : vector<2x8x8xf32> to vector<2x8xf32>
    %81 = vector.shape_cast %80 : vector<2x8xf32> to vector<2x8x1xf32>
    %82 = vector.broadcast %81 : vector<2x8x1xf32> to vector<2x8x8xf32>
    %83 = arith.divf %79, %82 : vector<2x8x8xf32>
    %84 = arith.truncf %83 : vector<2x8x8xf32> to vector<2x8x8xbf16>
    "tpu.trace_start"() <{level = 10 : i32, message = "bqk,bkd->bqd"}> : () -> ()
    %cst_28 = arith.constant dense<0.000000e+00> : vector<2x8x8xf32>
    %85 = tpu.matmul %84, %71, %cst_28 {dimension_numbers = #tpu.dot_dimension_numbers<[2], [1], [1], [2], [0, 0, 0, 1, 1, 2], [0], [0]>} : vector<2x8x8xbf16>, vector<2x8x8xbf16>, vector<2x8x8xf32> -> vector<2x8x8xf32>
    "tpu.trace_stop"() : () -> ()
    %86 = vector.shape_cast %85 : vector<2x8x8xf32> to vector<16x8xf32>
    %87 = arith.truncf %86 : vector<16x8xf32> to vector<16x8xbf16>
    %88 = vector.extract_strided_slice %7 {offsets = [16, 0], sizes = [8, 32], strides = [1, 1]} : vector<32x32xbf16> to vector<8x32xbf16>
    %cst_29 = arith.constant dense<0.000000e+00> : vector<16x32xf32>
    %89 = tpu.matmul %87, %88, %cst_29 {dimension_numbers = #tpu.dot_dimension_numbers<[1], [0], [0], [1], [0, 0, 1, 1], [], []>} : vector<16x8xbf16>, vector<8x32xbf16>, vector<16x32xf32> -> vector<16x32xf32>
    %90 = arith.addf %65, %89 : vector<16x32xf32>
    %91 = vector.extract_strided_slice %14 {offsets = [0, 0, 24], sizes = [2, 8, 8], strides = [1, 1, 1]} : vector<2x8x96xf32> to vector<2x8x8xf32>
    %92 = arith.truncf %91 : vector<2x8x8xf32> to vector<2x8x8xbf16>
    %93 = vector.extract_strided_slice %14 {offsets = [0, 0, 56], sizes = [2, 8, 8], strides = [1, 1, 1]} : vector<2x8x96xf32> to vector<2x8x8xf32>
    %94 = arith.truncf %93 : vector<2x8x8xf32> to vector<2x8x8xbf16>
    %95 = vector.extract_strided_slice %14 {offsets = [0, 0, 88], sizes = [2, 8, 8], strides = [1, 1, 1]} : vector<2x8x96xf32> to vector<2x8x8xf32>
    %96 = arith.truncf %95 : vector<2x8x8xf32> to vector<2x8x8xbf16>
    "tpu.trace_start"() <{level = 10 : i32, message = "bqd,bkd->bqk"}> : () -> ()
    %cst_30 = arith.constant dense<0.000000e+00> : vector<2x8x8xf32>
    %97 = tpu.matmul %92, %94, %cst_30 {dimension_numbers = #tpu.dot_dimension_numbers<[2], [2], [1], [1], [0, 0, 0, 1, 1, 1], [0], [0]>} : vector<2x8x8xbf16>, vector<2x8x8xbf16>, vector<2x8x8xf32> -> vector<2x8x8xf32>
    "tpu.trace_stop"() : () -> ()
    %cst_31 = arith.constant 0.353553385 : f32
    %98 = vector.broadcast %cst_31 : f32 to vector<2x8x8xf32>
    %99 = arith.mulf %97, %98 : vector<2x8x8xf32>
    %cst_32 = arith.constant dense<0xFF800000> : vector<2x8xf32>
    %100 = vector.multi_reduction <maximumf>, %99, %cst_32 [2] : vector<2x8x8xf32> to vector<2x8xf32>
    %101 = vector.shape_cast %100 : vector<2x8xf32> to vector<2x8x1xf32>
    %102 = vector.broadcast %101 : vector<2x8x1xf32> to vector<2x8x8xf32>
    %103 = arith.subf %99, %102 : vector<2x8x8xf32>
    %104 = math.exp %103 : vector<2x8x8xf32>
    %cst_33 = arith.constant dense<0.000000e+00> : vector<2x8xf32>
    %105 = vector.multi_reduction <add>, %104, %cst_33 [2] : vector<2x8x8xf32> to vector<2x8xf32>
    %106 = vector.shape_cast %105 : vector<2x8xf32> to vector<2x8x1xf32>
    %107 = vector.broadcast %106 : vector<2x8x1xf32> to vector<2x8x8xf32>
    %108 = arith.divf %104, %107 : vector<2x8x8xf32>
    %109 = arith.truncf %108 : vector<2x8x8xf32> to vector<2x8x8xbf16>
    "tpu.trace_start"() <{level = 10 : i32, message = "bqk,bkd->bqd"}> : () -> ()
    %cst_34 = arith.constant dense<0.000000e+00> : vector<2x8x8xf32>
    %110 = tpu.matmul %109, %96, %cst_34 {dimension_numbers = #tpu.dot_dimension_numbers<[2], [1], [1], [2], [0, 0, 0, 1, 1, 2], [0], [0]>} : vector<2x8x8xbf16>, vector<2x8x8xbf16>, vector<2x8x8xf32> -> vector<2x8x8xf32>
    "tpu.trace_stop"() : () -> ()
    %111 = vector.shape_cast %110 : vector<2x8x8xf32> to vector<16x8xf32>
    %112 = arith.truncf %111 : vector<16x8xf32> to vector<16x8xbf16>
    %113 = vector.extract_strided_slice %7 {offsets = [24, 0], sizes = [8, 32], strides = [1, 1]} : vector<32x32xbf16> to vector<8x32xbf16>
    %cst_35 = arith.constant dense<0.000000e+00> : vector<16x32xf32>
    %114 = tpu.matmul %112, %113, %cst_35 {dimension_numbers = #tpu.dot_dimension_numbers<[1], [0], [0], [1], [0, 0, 1, 1], [], []>} : vector<16x8xbf16>, vector<8x32xbf16>, vector<16x32xf32> -> vector<16x32xf32>
    %115 = arith.addf %90, %114 : vector<16x32xf32>
    %c0_36 = arith.constant 0 : index
    %c0_37 = arith.constant 0 : index
    %c0_38 = arith.constant 0 : index
    %116 = vector.load %arg8[%c0_36, %c0_37, %c0_38] : memref<1x1x32xf32, #tpu.memory_space<vmem>>, vector<1x1x32xf32>
    %117 = vector.shape_cast %116 : vector<1x1x32xf32> to vector<1x32xf32>
    %118 = vector.broadcast %117 : vector<1x32xf32> to vector<16x32xf32>
    %119 = arith.addf %115, %118 : vector<16x32xf32>
    %120 = arith.addf %3, %119 : vector<16x32xf32>
    %c0_39 = arith.constant 0 : index
    %c0_40 = arith.constant 0 : index
    %c0_41 = arith.constant 0 : index
    %121 = vector.load %arg9[%c0_39, %c0_40, %c0_41] : memref<1x1x32xf32, #tpu.memory_space<vmem>>, vector<1x1x32xf32>
    %122 = vector.shape_cast %121 : vector<1x1x32xf32> to vector<1x32xf32>
    %c0_42 = arith.constant 0 : index
    %c0_43 = arith.constant 0 : index
    %c0_44 = arith.constant 0 : index
    %123 = vector.load %arg10[%c0_42, %c0_43, %c0_44] : memref<1x1x32xf32, #tpu.memory_space<vmem>>, vector<1x1x32xf32>
    %124 = vector.shape_cast %123 : vector<1x1x32xf32> to vector<1x32xf32>
    %cst_45 = arith.constant dense<0.000000e+00> : vector<16xf32>
    %125 = vector.multi_reduction <add>, %120, %cst_45 [1] : vector<16x32xf32> to vector<16xf32>
    %126 = vector.shape_cast %125 : vector<16xf32> to vector<16x1xf32>
    %cst_46 = arith.constant 3.200000e+01 : f32
    %127 = vector.broadcast %cst_46 : f32 to vector<16x1xf32>
    %128 = arith.divf %126, %127 : vector<16x1xf32>
    %129 = vector.broadcast %128 : vector<16x1xf32> to vector<16x32xf32>
    %130 = arith.subf %120, %129 : vector<16x32xf32>
    %131 = arith.mulf %130, %130 : vector<16x32xf32>
    %cst_47 = arith.constant dense<0.000000e+00> : vector<16xf32>
    %132 = vector.multi_reduction <add>, %131, %cst_47 [1] : vector<16x32xf32> to vector<16xf32>
    %133 = vector.shape_cast %132 : vector<16xf32> to vector<16x1xf32>
    %cst_48 = arith.constant 3.200000e+01 : f32
    %134 = vector.broadcast %cst_48 : f32 to vector<16x1xf32>
    %135 = arith.divf %133, %134 : vector<16x1xf32>
    %136 = vector.broadcast %128 : vector<16x1xf32> to vector<16x32xf32>
    %137 = arith.subf %120, %136 : vector<16x32xf32>
    %cst_49 = arith.constant 9.99999974E-6 : f32
    %138 = vector.broadcast %cst_49 : f32 to vector<16x1xf32>
    %139 = arith.addf %135, %138 : vector<16x1xf32>
    %140 = math.rsqrt %139 : vector<16x1xf32>
    %141 = vector.broadcast %140 : vector<16x1xf32> to vector<16x32xf32>
    %142 = arith.mulf %137, %141 : vector<16x32xf32>
    %143 = vector.broadcast %122 : vector<1x32xf32> to vector<16x32xf32>
    %144 = arith.mulf %142, %143 : vector<16x32xf32>
    %145 = vector.broadcast %124 : vector<1x32xf32> to vector<16x32xf32>
    %146 = arith.addf %144, %145 : vector<16x32xf32>
    %c0_50 = arith.constant 0 : index
    %c0_51 = arith.constant 0 : index
    %c0_52 = arith.constant 0 : index
    %147 = vector.load %arg11[%c0_50, %c0_51, %c0_52] : memref<1x32x4xf32, #tpu.memory_space<vmem>>, vector<1x32x4xf32>
    %148 = vector.shape_cast %147 : vector<1x32x4xf32> to vector<32x4xf32>
    %cst_53 = arith.constant dense<0.000000e+00> : vector<16x4xf32>
    %149 = tpu.matmul %146, %148, %cst_53 {dimension_numbers = #tpu.dot_dimension_numbers<[1], [0], [0], [1], [0, 0, 1, 1], [], []>} : vector<16x32xf32>, vector<32x4xf32>, vector<16x4xf32> -> vector<16x4xf32>
    %c0_54 = arith.constant 0 : index
    %c0_55 = arith.constant 0 : index
    %c0_56 = arith.constant 0 : index
    %150 = vector.load %arg12[%c0_54, %c0_55, %c0_56] : memref<1x1x4xf32, #tpu.memory_space<vmem>>, vector<1x1x4xf32>
    %151 = vector.shape_cast %150 : vector<1x1x4xf32> to vector<1x4xf32>
    %152 = vector.broadcast %151 : vector<1x4xf32> to vector<16x4xf32>
    %153 = arith.addf %149, %152 : vector<16x4xf32>
    %154 = tpu.iota {dimensions = array<i32: 1>} : vector<16x4xi32>
    %cst_57 = arith.constant 0.000000e+00 : f32
    %155 = vector.broadcast %cst_57 : f32 to vector<16x4xf32>
    %156 = vector.extract_strided_slice %153 {offsets = [0, 0], sizes = [16, 1], strides = [1, 1]} : vector<16x4xf32> to vector<16x1xf32>
    %157 = vector.broadcast %156 : vector<16x1xf32> to vector<16x4xf32>
    %158 = arith.cmpf ogt, %157, %153 : vector<16x4xf32>
    %159 = vector.broadcast %156 : vector<16x1xf32> to vector<16x4xf32>
    %160 = arith.cmpf oeq, %159, %153 : vector<16x4xf32>
    %c0_i32_58 = arith.constant 0 : i32
    %161 = vector.broadcast %c0_i32_58 : i32 to vector<16x4xi32>
    %162 = arith.cmpi sgt, %154, %161 : vector<16x4xi32>
    %163 = arith.andi %160, %162 : vector<16x4xi1>
    %164 = arith.ori %158, %163 : vector<16x4xi1>
    %165 = arith.extui %164 : vector<16x4xi1> to vector<16x4xi32>
    %166 = arith.sitofp %165 : vector<16x4xi32> to vector<16x4xf32>
    %167 = arith.addf %155, %166 : vector<16x4xf32>
    %168 = vector.extract_strided_slice %153 {offsets = [0, 1], sizes = [16, 1], strides = [1, 1]} : vector<16x4xf32> to vector<16x1xf32>
    %169 = vector.broadcast %168 : vector<16x1xf32> to vector<16x4xf32>
    %170 = arith.cmpf ogt, %169, %153 : vector<16x4xf32>
    %171 = vector.broadcast %168 : vector<16x1xf32> to vector<16x4xf32>
    %172 = arith.cmpf oeq, %171, %153 : vector<16x4xf32>
    %c1_i32 = arith.constant 1 : i32
    %173 = vector.broadcast %c1_i32 : i32 to vector<16x4xi32>
    %174 = arith.cmpi sgt, %154, %173 : vector<16x4xi32>
    %175 = arith.andi %172, %174 : vector<16x4xi1>
    %176 = arith.ori %170, %175 : vector<16x4xi1>
    %177 = arith.extui %176 : vector<16x4xi1> to vector<16x4xi32>
    %178 = arith.sitofp %177 : vector<16x4xi32> to vector<16x4xf32>
    %179 = arith.addf %167, %178 : vector<16x4xf32>
    %180 = vector.extract_strided_slice %153 {offsets = [0, 2], sizes = [16, 1], strides = [1, 1]} : vector<16x4xf32> to vector<16x1xf32>
    %181 = vector.broadcast %180 : vector<16x1xf32> to vector<16x4xf32>
    %182 = arith.cmpf ogt, %181, %153 : vector<16x4xf32>
    %183 = vector.broadcast %180 : vector<16x1xf32> to vector<16x4xf32>
    %184 = arith.cmpf oeq, %183, %153 : vector<16x4xf32>
    %c2_i32 = arith.constant 2 : i32
    %185 = vector.broadcast %c2_i32 : i32 to vector<16x4xi32>
    %186 = arith.cmpi sgt, %154, %185 : vector<16x4xi32>
    %187 = arith.andi %184, %186 : vector<16x4xi1>
    %188 = arith.ori %182, %187 : vector<16x4xi1>
    %189 = arith.extui %188 : vector<16x4xi1> to vector<16x4xi32>
    %190 = arith.sitofp %189 : vector<16x4xi32> to vector<16x4xf32>
    %191 = arith.addf %179, %190 : vector<16x4xf32>
    %192 = vector.extract_strided_slice %153 {offsets = [0, 3], sizes = [16, 1], strides = [1, 1]} : vector<16x4xf32> to vector<16x1xf32>
    %193 = vector.broadcast %192 : vector<16x1xf32> to vector<16x4xf32>
    %194 = arith.cmpf ogt, %193, %153 : vector<16x4xf32>
    %195 = vector.broadcast %192 : vector<16x1xf32> to vector<16x4xf32>
    %196 = arith.cmpf oeq, %195, %153 : vector<16x4xf32>
    %c3_i32 = arith.constant 3 : i32
    %197 = vector.broadcast %c3_i32 : i32 to vector<16x4xi32>
    %198 = arith.cmpi sgt, %154, %197 : vector<16x4xi32>
    %199 = arith.andi %196, %198 : vector<16x4xi1>
    %200 = arith.ori %194, %199 : vector<16x4xi1>
    %201 = arith.extui %200 : vector<16x4xi1> to vector<16x4xi32>
    %202 = arith.sitofp %201 : vector<16x4xi32> to vector<16x4xf32>
    %203 = arith.addf %191, %202 : vector<16x4xf32>
    %cst_59 = arith.constant 2.000000e+00 : f32
    %204 = vector.broadcast %cst_59 : f32 to vector<16x4xf32>
    %205 = arith.cmpf olt, %203, %204 : vector<16x4xf32>
    %cst_60 = arith.constant -1.000000e+30 : f32
    %206 = vector.broadcast %cst_60 : f32 to vector<16x4xf32>
    %207 = arith.select %205, %153, %206 : vector<16x4xi1>, vector<16x4xf32>
    %cst_61 = arith.constant dense<0xFF800000> : vector<16xf32>
    %208 = vector.multi_reduction <maximumf>, %207, %cst_61 [1] : vector<16x4xf32> to vector<16xf32>
    %209 = vector.shape_cast %208 : vector<16xf32> to vector<16x1xf32>
    %210 = vector.broadcast %209 : vector<16x1xf32> to vector<16x4xf32>
    %211 = arith.subf %153, %210 : vector<16x4xf32>
    %212 = math.exp %211 : vector<16x4xf32>
    %cst_62 = arith.constant 0.000000e+00 : f32
    %213 = vector.broadcast %cst_62 : f32 to vector<16x4xf32>
    %214 = arith.select %205, %212, %213 : vector<16x4xi1>, vector<16x4xf32>
    %cst_63 = arith.constant dense<0.000000e+00> : vector<16xf32>
    %215 = vector.multi_reduction <add>, %214, %cst_63 [1] : vector<16x4xf32> to vector<16xf32>
    %216 = vector.shape_cast %215 : vector<16xf32> to vector<16x1xf32>
    %217 = tpu.reciprocal %216 {approx = true} : vector<16x1xf32> -> vector<16x1xf32>
    %218 = vector.broadcast %217 : vector<16x1xf32> to vector<16x4xf32>
    %219 = arith.mulf %214, %218 : vector<16x4xf32>
    %220 = arith.truncf %146 : vector<16x32xf32> to vector<16x32xbf16>
    %c0_64 = arith.constant 0 : index
    %c0_65 = arith.constant 0 : index
    %c0_66 = arith.constant 0 : index
    %221 = vector.load %arg13[%c0_64, %c0_65, %c0_66] : memref<1x32x256xbf16, #tpu.memory_space<vmem>>, vector<1x32x256xbf16>
    %222 = vector.shape_cast %221 : vector<1x32x256xbf16> to vector<32x256xbf16>
    %cst_67 = arith.constant dense<0.000000e+00> : vector<16x256xf32>
    %223 = tpu.matmul %220, %222, %cst_67 {dimension_numbers = #tpu.dot_dimension_numbers<[1], [0], [0], [1], [0, 0, 1, 1], [], []>} : vector<16x32xbf16>, vector<32x256xbf16>, vector<16x256xf32> -> vector<16x256xf32>
    %c0_68 = arith.constant 0 : index
    %c0_69 = arith.constant 0 : index
    %c0_70 = arith.constant 0 : index
    %224 = vector.load %arg14[%c0_68, %c0_69, %c0_70] : memref<1x1x256xf32, #tpu.memory_space<vmem>>, vector<1x1x256xf32>
    %225 = vector.shape_cast %224 : vector<1x1x256xf32> to vector<1x256xf32>
    %226 = vector.broadcast %225 : vector<1x256xf32> to vector<16x256xf32>
    %227 = arith.addf %223, %226 : vector<16x256xf32>
    %cst_71 = arith.constant 0.000000e+00 : f32
    %228 = vector.broadcast %cst_71 : f32 to vector<16x256xf32>
    %229 = arith.maximumf %227, %228 : vector<16x256xf32>
    %c0_72 = arith.constant 0 : index
    %c0_73 = arith.constant 0 : index
    %230 = vector.load %arg19[%c0_72, %c0_73] : memref<4x256xf32, #tpu.memory_space<vmem>>, vector<4x256xf32>
    %cst_74 = arith.constant dense<0.000000e+00> : vector<16x256xf32>
    %231 = tpu.matmul %219, %230, %cst_74 {dimension_numbers = #tpu.dot_dimension_numbers<[1], [0], [0], [1], [0, 0, 1, 1], [], []>} : vector<16x4xf32>, vector<4x256xf32>, vector<16x256xf32> -> vector<16x256xf32>
    %232 = arith.mulf %229, %231 : vector<16x256xf32>
    %233 = arith.truncf %232 : vector<16x256xf32> to vector<16x256xbf16>
    %c0_75 = arith.constant 0 : index
    %c0_76 = arith.constant 0 : index
    %c0_77 = arith.constant 0 : index
    %234 = vector.load %arg15[%c0_75, %c0_76, %c0_77] : memref<1x256x32xbf16, #tpu.memory_space<vmem>>, vector<1x256x32xbf16>
    %235 = vector.shape_cast %234 : vector<1x256x32xbf16> to vector<256x32xbf16>
    %cst_78 = arith.constant dense<0.000000e+00> : vector<16x32xf32>
    %236 = tpu.matmul %233, %235, %cst_78 {dimension_numbers = #tpu.dot_dimension_numbers<[1], [0], [0], [1], [0, 0, 1, 1], [], []>} : vector<16x256xbf16>, vector<256x32xbf16>, vector<16x32xf32> -> vector<16x32xf32>
    %c0_79 = arith.constant 0 : index
    %c0_80 = arith.constant 0 : index
    %c0_81 = arith.constant 0 : index
    %237 = vector.load %arg16[%c0_79, %c0_80, %c0_81] : memref<1x4x32xf32, #tpu.memory_space<vmem>>, vector<1x4x32xf32>
    %238 = vector.shape_cast %237 : vector<1x4x32xf32> to vector<4x32xf32>
    %cst_82 = arith.constant dense<0.000000e+00> : vector<16x32xf32>
    %239 = tpu.matmul %219, %238, %cst_82 {dimension_numbers = #tpu.dot_dimension_numbers<[1], [0], [0], [1], [0, 0, 1, 1], [], []>} : vector<16x4xf32>, vector<4x32xf32>, vector<16x32xf32> -> vector<16x32xf32>
    %240 = arith.addf %236, %239 : vector<16x32xf32>
    %241 = arith.addf %146, %240 : vector<16x32xf32>
    %c0_83 = arith.constant 0 : index
    %c0_84 = arith.constant 0 : index
    %c0_85 = arith.constant 0 : index
    %242 = vector.load %arg17[%c0_83, %c0_84, %c0_85] : memref<1x1x32xf32, #tpu.memory_space<vmem>>, vector<1x1x32xf32>
    %243 = vector.shape_cast %242 : vector<1x1x32xf32> to vector<1x32xf32>
    %c0_86 = arith.constant 0 : index
    %c0_87 = arith.constant 0 : index
    %c0_88 = arith.constant 0 : index
    %244 = vector.load %arg18[%c0_86, %c0_87, %c0_88] : memref<1x1x32xf32, #tpu.memory_space<vmem>>, vector<1x1x32xf32>
    %245 = vector.shape_cast %244 : vector<1x1x32xf32> to vector<1x32xf32>
    %cst_89 = arith.constant dense<0.000000e+00> : vector<16xf32>
    %246 = vector.multi_reduction <add>, %241, %cst_89 [1] : vector<16x32xf32> to vector<16xf32>
    %247 = vector.shape_cast %246 : vector<16xf32> to vector<16x1xf32>
    %cst_90 = arith.constant 3.200000e+01 : f32
    %248 = vector.broadcast %cst_90 : f32 to vector<16x1xf32>
    %249 = arith.divf %247, %248 : vector<16x1xf32>
    %250 = vector.broadcast %249 : vector<16x1xf32> to vector<16x32xf32>
    %251 = arith.subf %241, %250 : vector<16x32xf32>
    %252 = arith.mulf %251, %251 : vector<16x32xf32>
    %cst_91 = arith.constant dense<0.000000e+00> : vector<16xf32>
    %253 = vector.multi_reduction <add>, %252, %cst_91 [1] : vector<16x32xf32> to vector<16xf32>
    %254 = vector.shape_cast %253 : vector<16xf32> to vector<16x1xf32>
    %cst_92 = arith.constant 3.200000e+01 : f32
    %255 = vector.broadcast %cst_92 : f32 to vector<16x1xf32>
    %256 = arith.divf %254, %255 : vector<16x1xf32>
    %257 = vector.broadcast %249 : vector<16x1xf32> to vector<16x32xf32>
    %258 = arith.subf %241, %257 : vector<16x32xf32>
    %cst_93 = arith.constant 9.99999974E-6 : f32
    %259 = vector.broadcast %cst_93 : f32 to vector<16x1xf32>
    %260 = arith.addf %256, %259 : vector<16x1xf32>
    %261 = math.rsqrt %260 : vector<16x1xf32>
    %262 = vector.broadcast %261 : vector<16x1xf32> to vector<16x32xf32>
    %263 = arith.mulf %258, %262 : vector<16x32xf32>
    %264 = vector.broadcast %243 : vector<1x32xf32> to vector<16x32xf32>
    %265 = arith.mulf %263, %264 : vector<16x32xf32>
    %266 = vector.broadcast %245 : vector<1x32xf32> to vector<16x32xf32>
    %267 = arith.addf %265, %266 : vector<16x32xf32>
    %c0_94 = arith.constant 0 : index
    %c0_95 = arith.constant 0 : index
    %268 = vector.load %arg21[%c0_94, %c0_95] : memref<16x32xf32, #tpu.memory_space<vmem>>, vector<16x32xf32>
    tpu.vector_store %arg21[%c0_94, %c0_95], %267 {strides = array<i32>} : memref<16x32xf32, #tpu.memory_space<vmem>>, vector<16x32xf32>,
    %c1_i32_96 = arith.constant 1 : i32
    %269 = arith.cmpi eq, %arg1, %c1_i32_96 : i32
    %270 = arith.extui %269 : i1 to i32
    %c0_i32_97 = arith.constant 0 : i32
    %271 = arith.cmpi ne, %270, %c0_i32_97 : i32
    scf.if %271 {
      %272 = vector.shape_cast %267 : vector<16x32xf32> to vector<2x8x32xf32>
      %273 = vector.extract_strided_slice %272 {offsets = [0, 7, 0], sizes = [2, 1, 32], strides = [1, 1, 1]} : vector<2x8x32xf32> to vector<2x1x32xf32>
      %c0_98 = arith.constant 0 : index
      %c0_99 = arith.constant 0 : index
      %c0_100 = arith.constant 0 : index
      %274 = vector.load %arg20[%c0_98, %c0_99, %c0_100] : memref<2x1x32xf32, #tpu.memory_space<vmem>>, vector<2x1x32xf32>
      tpu.vector_store %arg20[%c0_98, %c0_99, %c0_100], %273 {strides = array<i32>} : memref<2x1x32xf32, #tpu.memory_space<vmem>>, vector<2x1x32xf32>,
    } else {
    }
    return
  }
  func.func @transform_0(%arg0: i32, %arg1: i32) -> (i32, i32, i32) {
    %c0_i32 = arith.constant 0 : i32
    %c0_i32_0 = arith.constant 0 : i32
    %c0_i32_1 = arith.constant 0 : i32
    return %arg0, %c0_i32, %c0_i32_0 : i32, i32, i32
  }
  func.func @transform_1(%arg0: i32, %arg1: i32) -> (i32, i32) {
    %c0_i32 = arith.constant 0 : i32
    %c0_i32_0 = arith.constant 0 : i32
    %c0_i32_1 = arith.constant 0 : i32
    return %c0_i32, %c0_i32_0 : i32, i32
  }
  func.func @transform_2(%arg0: i32, %arg1: i32) -> (i32, i32) {
    %c0_i32 = arith.constant 0 : i32
    %c0_i32_0 = arith.constant 0 : i32
    %c0_i32_1 = arith.constant 0 : i32
    return %c0_i32, %c0_i32_0 : i32, i32
  }
  func.func @transform_3(%arg0: i32, %arg1: i32) -> (i32, i32, i32) {
    %c0_i32 = arith.constant 0 : i32
    %c0_i32_0 = arith.constant 0 : i32
    %c0_i32_1 = arith.constant 0 : i32
    return %arg1, %c0_i32, %c0_i32_0 : i32, i32, i32
  }
  func.func @transform_4(%arg0: i32, %arg1: i32) -> (i32, i32, i32) {
    %c0_i32 = arith.constant 0 : i32
    %c0_i32_0 = arith.constant 0 : i32
    %c0_i32_1 = arith.constant 0 : i32
    return %arg1, %c0_i32, %c0_i32_0 : i32, i32, i32
  }
  func.func @transform_5(%arg0: i32, %arg1: i32) -> (i32, i32, i32) {
    %c0_i32 = arith.constant 0 : i32
    %c0_i32_0 = arith.constant 0 : i32
    %c0_i32_1 = arith.constant 0 : i32
    return %arg1, %c0_i32, %c0_i32_0 : i32, i32, i32
  }
  func.func @transform_6(%arg0: i32, %arg1: i32) -> (i32, i32, i32) {
    %c0_i32 = arith.constant 0 : i32
    %c0_i32_0 = arith.constant 0 : i32
    %c0_i32_1 = arith.constant 0 : i32
    return %arg1, %c0_i32, %c0_i32_0 : i32, i32, i32
  }
  func.func @transform_7(%arg0: i32, %arg1: i32) -> (i32, i32, i32) {
    %c0_i32 = arith.constant 0 : i32
    %c0_i32_0 = arith.constant 0 : i32
    %c0_i32_1 = arith.constant 0 : i32
    return %arg1, %c0_i32, %c0_i32_0 : i32, i32, i32
  }
  func.func @transform_8(%arg0: i32, %arg1: i32) -> (i32, i32, i32) {
    %c0_i32 = arith.constant 0 : i32
    %c0_i32_0 = arith.constant 0 : i32
    %c0_i32_1 = arith.constant 0 : i32
    return %arg1, %c0_i32, %c0_i32_0 : i32, i32, i32
  }
  func.func @transform_9(%arg0: i32, %arg1: i32) -> (i32, i32, i32) {
    %c0_i32 = arith.constant 0 : i32
    %c0_i32_0 = arith.constant 0 : i32
    %c0_i32_1 = arith.constant 0 : i32
    return %arg1, %c0_i32, %c0_i32_0 : i32, i32, i32
  }
  func.func @transform_10(%arg0: i32, %arg1: i32) -> (i32, i32, i32) {
    %c0_i32 = arith.constant 0 : i32
    %c0_i32_0 = arith.constant 0 : i32
    %c0_i32_1 = arith.constant 0 : i32
    return %arg1, %c0_i32, %c0_i32_0 : i32, i32, i32
  }
  func.func @transform_11(%arg0: i32, %arg1: i32) -> (i32, i32, i32) {
    %c0_i32 = arith.constant 0 : i32
    %c0_i32_0 = arith.constant 0 : i32
    %c0_i32_1 = arith.constant 0 : i32
    return %arg1, %c0_i32, %c0_i32_0 : i32, i32, i32
  }
  func.func @transform_12(%arg0: i32, %arg1: i32) -> (i32, i32, i32) {
    %c0_i32 = arith.constant 0 : i32
    %c0_i32_0 = arith.constant 0 : i32
    %c0_i32_1 = arith.constant 0 : i32
    return %arg1, %c0_i32, %c0_i32_0 : i32, i32, i32
  }
  func.func @transform_13(%arg0: i32, %arg1: i32) -> (i32, i32, i32) {
    %c0_i32 = arith.constant 0 : i32
    %c0_i32_0 = arith.constant 0 : i32
    %c0_i32_1 = arith.constant 0 : i32
    return %arg1, %c0_i32, %c0_i32_0 : i32, i32, i32
  }
  func.func @transform_14(%arg0: i32, %arg1: i32) -> (i32, i32, i32) {
    %c0_i32 = arith.constant 0 : i32
    %c0_i32_0 = arith.constant 0 : i32
    %c0_i32_1 = arith.constant 0 : i32
    return %arg1, %c0_i32, %c0_i32_0 : i32, i32, i32
  }
  func.func @transform_15(%arg0: i32, %arg1: i32) -> (i32, i32, i32) {
    %c0_i32 = arith.constant 0 : i32
    %c0_i32_0 = arith.constant 0 : i32
    %c0_i32_1 = arith.constant 0 : i32
    return %arg1, %c0_i32, %c0_i32_0 : i32, i32, i32
  }
  func.func @transform_16(%arg0: i32, %arg1: i32) -> (i32, i32, i32) {
    %c0_i32 = arith.constant 0 : i32
    %c0_i32_0 = arith.constant 0 : i32
    %c0_i32_1 = arith.constant 0 : i32
    return %arg1, %c0_i32, %c0_i32_0 : i32, i32, i32
  }
  func.func @transform_17(%arg0: i32, %arg1: i32) -> (i32, i32) {
    %c0_i32 = arith.constant 0 : i32
    %c0_i32_0 = arith.constant 0 : i32
    %c0_i32_1 = arith.constant 0 : i32
    return %c0_i32, %c0_i32_0 : i32, i32
  }
  func.func @transform_18(%arg0: i32, %arg1: i32) -> (i32, i32, i32) {
    %c0_i32 = arith.constant 0 : i32
    %c0_i32_0 = arith.constant 0 : i32
    %c0_i32_1 = arith.constant 0 : i32
    return %arg0, %c0_i32, %c0_i32_0 : i32, i32, i32
  }
}

</mosaic_0001>

<bundles_post_ra>
// kernel: tpu_custom_call.1
= control target key start
LH: loop header
LB: loop body
LE: loop exit
PB: predicated region body
PF: predicated region fallthrough
CT: control target
= control target key end

     0   :  { %s3266_s0 = inlined_call_operand.vmem [shape: f32[2,8,4], index: 0, kind: input, shape index: {}]   ;;  %s3267_s1 = inlined_call_operand.vmem [shape: f32[8,32], index: 1, kind: input, shape index: {}]   ;;  %s3268_s2 = inlined_call_operand.vmem [shape: bf16[4,32], index: 2, kind: input, shape index: {}]   ;;  %s3269_s3 = inlined_call_operand.vmem [shape: bf16[2,32,96], index: 3, kind: input, shape index: {}]   ;;  %s3270_s4 = inlined_call_operand.vmem [shape: f32[2,1,96], index: 4, kind: input, shape index: {}]   ;;  %s3271_s5 = inlined_call_operand.vmem [shape: bf16[2,32,32], index: 5, kind: input, shape index: {}]   ;;  %s3272_s6 = inlined_call_operand.vmem [shape: f32[2,1,32], index: 6, kind: input, shape index: {}]   ;;  %s3273_s7 = inlined_call_operand.vmem [shape: f32[2,1,32], index: 7, kind: input, shape index: {}]   ;;  %s3274_s8 = inlined_call_operand.vmem [shape: f32[2,1,32], index: 8, kind: input, shape index: {}]   ;;  %s3275_s9 = inlined_call_operand.vmem [shape: f32[2,32,4], index: 9, kind: input, shape index: {}]   ;;  %s3276_s10 = inlined_call_operand.vmem [shape: f32[2,1,4], index: 10, kind: input, shape index: {}]   ;;  %s3277_s11 = inlined_call_operand.vmem [shape: bf16[2,32,256], index: 11, kind: input, shape index: {}]   ;;  %s3278_s12 = inlined_call_operand.vmem [shape: f32[2,1,256], index: 12, kind: input, shape index: {}]   ;;  %s3279_s13 = inlined_call_operand.vmem [shape: bf16[2,256,32], index: 13, kind: input, shape index: {}]   ;;  %s3280_s14 = inlined_call_operand.vmem [shape: f32[2,4,32], index: 14, kind: input, shape index: {}]   ;;  %s3281_s15 = inlined_call_operand.vmem [shape: f32[2,1,32], index: 15, kind: input, shape index: {}]   ;;  %s3282_s16 = inlined_call_operand.vmem [shape: f32[2,1,32], index: 16, kind: input, shape index: {}]   ;;  %s3283_s17 = inlined_call_operand.vmem [shape: f32[4,256], index: 17, kind: input, shape index: {}]   ;;  %s3284_s18 = inlined_call_operand.hbm [shape: f32[2,1,32], index: 18, kind: output, shape index: {}]  }
   0x1   :  { %3295 = sst [smem:[#allocation9_spill]] %s3266_s0 }
   0x2   :  { %3296 = sst [smem:[#allocation10_spill]] %s3267_s1 }
   0x3   :  { %3297 = sst [smem:[#allocation11_spill]] %s3268_s2 }
   0x4   :  { %3298 = sst [smem:[#allocation12_spill]] %s3269_s3 }
   0x5   :  { %3299 = sst [smem:[#allocation13_spill]] %s3270_s4 }
   0x6   :  { %3300 = sst [smem:[#allocation14_spill]] %s3271_s5 }
   0x7   :  { %3301 = sst [smem:[#allocation15_spill]] %s3275_s9 }
   0x8   :  { %3302 = sst [smem:[#allocation16_spill]] %s3277_s11 }
   0x9   :  { %3303 = sst [smem:[#allocation17_spill]] %s3278_s12 }
   0xa   :  { %3304 = sst [smem:[#allocation18_spill]] %s3283_s17 }
   0xb   :  { %3305 = sst [smem:[#allocation19_spill]] %s3284_s18 }
   0xc   :  { %23 = vsyncpa [#allocation4], 0  ;;  %s2850_s27 = smov 0   ;;  %s2852_s28 = smov 0  }
   0xd   :  { %s2854_s29 = smov 0  }
   0xe LB: > { %3306 = sst [smem:[#allocation6_spill]] %s2729_s28  ;;  %s38_s0 = sadd.s32 1, %s2729_s28  ;;  %s2733_s29 = sphi %s2854_s29, %s29_s29   ;;  %s2729_s28 = sphi %s2852_s28, %s3352_s28   ;;  %s2725_s27 = sphi %s2850_s27, %s3351_s27  }
   0xf   : > { %3307 = sst [smem:[#allocation7_spill]] %s2733_s29  ;;  %p39_p0 = scmp.ge.s32.totalorder %s38_s0, 2 }
  0x10   : > { %p2383_p1 = scmp.ge.s32.totalorder %s2733_s29, 1  ;;  %p650_p2 = scmp.lt.s32.totalorder %s2733_s29, 3 }
  0x11   : > { %s3354_s0 = smov (%p39_p0, %s38_s0), 0 }
  0x12   : > { %3308 = sst [smem:[#allocation8_spill]] %s3354_s0  ;;  %p651_p3 = pnand %p2383_p1, %p650_p2 }
  0x13   : > { %p759_p4 = scmp.lt.s32.totalorder (!%p651_p3), %s2725_s27, 1  ;;  %s3310_s3 = sld [smem:[#allocation12_spill]] (!%p651_p3) }
  0x14   : > { %654 = sbr.rel (%p651_p3) target bundleno = 3738 (0xe9a), region = 92  ;;  %s3311_s5 = sld [smem:[#allocation14_spill]] (!%p651_p3) }
  0x15   : > { %s3312_s9 = sld [smem:[#allocation15_spill]] (!%p651_p3)  ;;  %p2396_p5 = scmp.ne.s32.totalorder (!%p651_p3), %s2725_s27, 0 }
  0x16   : > { %s3313_s11 = sld [smem:[#allocation16_spill]] (!%p651_p3) }
  0x17   : > { %s3314_s12 = sld [smem:[#allocation17_spill]] (!%p651_p3) }
  0x19   : > { %s2873_s19 = scalar_select %p759_p4, %s2725_s27, 1 }
  0x1a   : > { %s3317_s28 = sld [smem:[#allocation10_spill]] (!%p2396_p5) }
  0x1b   : > { %s2533_s1 = sshll.u32 %s2873_s19, 4  ;;  %s2535_s23 = sshll.u32 %s2873_s19, 5 }
  0x1c   : > { %s2883_s24 = scalar_lea.vmem %s3310_s3, %s2533_s1  ;;  %s2888_s30 = scalar_lea.vmem %s3311_s5, %s2533_s1 }
  0x1d   : > { %s2906_s25 = scalar_lea.vmem %s3312_s9, %s2535_s23  ;;  %s2915_s18 = scalar_lea.vmem %s3313_s11, %s2535_s23 }
  0x1e   : > { %s2392_s17 = sshll.u32 %s2873_s19, 1  ;;  %s2537_s21 = sshll.u32 %s2873_s19, 7 }
  0x1f   : > { %s2921_s22 = scalar_lea.vmem %s3314_s12, %s2392_s17  ;;  %s2927_s4 = scalar_lea.vmem %s3279_s13, %s2537_s21 }
  0x20   : > { %s2395_s9 = sshll.u32 %s2873_s19, 2  ;;  %s809_s0 = scalar_lea.vmem %s3281_s15, %s2873_s19 }
  0x21   : > { %s2933_s5 = scalar_lea.vmem %s3280_s14, %s2395_s9  ;;  %s812_s17 = scalar_lea.vmem %s3282_s16, %s2873_s19 }
  0x22   : > { %818 = sbr.rel (%p2396_p5) target bundleno = 182 (0xb6), region = 96  ;;  %s3315_s21 = sld [smem:[#allocation11_spill]] (!%p2396_p5) }
  0x23   : > { %s3316_s9 = sld [smem:[#allocation9_spill]] (!%p2396_p5) }
  0x27   : > { %vm827_vm0 = vcmask 1041408   ;;  %vm823_vm1 = vcmask 31744   ;;  %v845_v5 = vld [vmem:[%s3317_s28] sm:$0xff]  ;;  %vm848_vm2 = vcmask 261120  }
  0x28   : > { %v822_v0 = vld [vmem:[%s3315_s21] sm:$0x3] }
  0x29   : > { %v819_v1 = vld [vmem:[%s3316_s9] sm:$0xff]  ;;  %v820_v2 = vld [vmem:[%s3316_s9 + $0x8] sm:$0xff]  ;;  %v829_v3 = vsel %vm827_vm0, %v822_v0, 0 }
  0x2a   : > { %v821_v4 = vpack.c.bf16 %v820_v2, %v819_v1  ;;  %838 = vmatpush.bf16.msra.mxu0 %v829_v3 }
  0x2d   : > { %2397 = vmatmul.msk.bf16.vlgmr.msra.gmra.mxu0 %vm823_vm1, %v821_v4 }
  0xaa   : > { %v840_v6 = vpop.f32.mrf.mxu0 }
  0xab   : > { %v846_v7 = vadd.f32 %v845_v5, %v840_v6 }
  0xad   : > { %849 = vst.msk [vmem:[#allocation2] sm:$0xff] %vm848_vm2, %v846_v7 }
  0xb2   : > { %v842_v8 = vpop.f32.mrf.mxu0 }
  0xb3   : > { %v847_v9 = vadd.f32 %v845_v5, %v842_v8 }
  0xb5   : > { %850 = vst.msk [vmem:[#allocation2 + $0x8] sm:$0xff] %vm848_vm2, %v847_v9 }
  0xb6 PF: > { %v2539_v10 = vld [vmem:[%s2883_s24 + $0x8] sm:$0xff]  ;;  %v2538_v11 = vld [vmem:[%s2883_s24] sm:$0xff]  ;;  %vm3288_vm3 = vcmask 261120   ;;  %s3318_s2 = sld [smem:[#allocation13_spill]]  ;;  %s2735_s24 = smov 88   ;;  %vm903_vm4 = vcmask 64512  }
  0xb7   : > { %v2958_v12 = vld [vmem:[#allocation2] sm:$0xff]  ;;  %888 = vmatpush.bf16.msra.mxu0 %v2539_v10  ;;  %s2736_s21 = smov 96   ;;  %s2737_s3 = smov 120   ;;  %vm3289_vm5 = vcmask 1043456  }
  0xb8   : > { %s2738_s1 = smov 56   ;;  %s2739_s26 = smov 80  }
  0xb9   : > { %s2740_s11 = smov 64   ;;  %s2741_s23 = smov 112  }
  0xba   : > { %s2742_s28 = smov 72   ;;  %s2743_s12 = smov 104  }
  0xbb   : > { %889 = vmatpush.bf16.msra.mxu0 %v2538_v11  ;;  %s2744_s20 = smov 48   ;;  %p2528_p6 = scmp.ne.s32.totalorder %s2725_s27, 1 }
  0xbc   : > { %v2960_v13 = vld [vmem:[#allocation2 + $0x8] sm:$0xff]  ;;  %s3319_s29 = scalar_lea.vmem %s3318_s2, %s2873_s19  ;;  %s2745_s2 = smov 40  }
  0xbd   : > { %v861_v14 = vpack.c.bf16 %v2960_v13, %v2958_v12  ;;  %v2622_v15 = vld [vmem:[%s3319_s29] ss:$0 sm:$0xff] }
  0xbf   : > { %2406 = vmatmul.msk.bf16.vlgmr.msra.gmra.mxu0 %vm3288_vm3, %v861_v14 }
 0x13c   : > { %v891_v16 = vpop.f32.mrf.mxu0 }
 0x13d   : > { %v892_v17 = vadd.f32 %v2622_v15, %v891_v16 }
 0x13f   : > { %v896_v18 = vpack.c.bf16 %v892_v17, %v892_v17 }
 0x141   : > { %v899_v19 = vunpack.c.l.b16 %v896_v18 }
 0x143   : > { %v2970_v20 = vpack.c.b16 %v899_v19, %v899_v19 }
 0x144   : > { %v893_v21 = vpop.f32.mrf.mxu0 }
 0x145   : > { %1045 = vrot.lane.b32.xlu2 %v2970_v20, %s2735_s24  ;;  %901 = vrot.lane.b32.xlu0 %v2970_v20, %s2736_s21  ;;  %v894_v22 = vadd.f32 %v2622_v15, %v893_v21 }
 0x147   : > { %v897_v23 = vpack.c.bf16 %v894_v22, %v894_v22 }
 0x149   : > { %v924_v24 = vunpack.c.l.b16 %v897_v23 }
 0x14b   : > { %v2975_v25 = vpack.c.b16 %v924_v24, %v924_v24 }
 0x14d   : > { %1043 = vrot.lane.b32.xlu2 %v2970_v20, %s2737_s3 }
 0x155   : > { %926 = vrot.lane.b32.xlu2 %v2975_v25, %s2736_s21  ;;  %s3320_s21 = scalar_lea.vmem %s3272_s6, %s2873_s19 }
 0x15d   : > { %1068 = vrot.lane.b32.xlu2 %v2975_v25, %s2735_s24 }
 0x165   : > { %1066 = vrot.lane.b32.xlu2 %v2975_v25, %s2737_s3 }
 0x19f   : > { %v2980_v26 = vpop.permute.xlu2 %1045 }
 0x1a0   : > { %v1051_v4 = vsel %vm903_vm4, %v2980_v26, 0 }
 0x1a7   : > { %v2982_v27 = vpop.permute.xlu2 %1043 }
 0x1af   : > { %v927_v28 = vpop.permute.xlu2 %926 }
 0x1b0   : > { %v932_v29 = vsel %vm903_vm4, %v927_v28, 0 }
 0x1b1   : > { %941 = vmatpush.bf16.xpose.msra.mxu2 %v932_v29 }
 0x1b7   : > { %v1069_v30 = vpop.permute.xlu2 %1068  ;;  %v902_v31 = vpop.permute.xlu0 %901 }
 0x1b8   : > { %2408 = vmatmul.msk.bf16.vlgmr.msra.gmra.mxu2 %vm903_vm4, %v897_v23  ;;  %v908_v32 = vsel %vm903_vm4, %v902_v31, 0  ;;  %v1074_v33 = vsel %vm903_vm4, %v1069_v30, 0 }
 0x1b9   : > { %917 = vmatpush.bf16.xpose.msra.mxu1 %v908_v32 }
 0x1bf   : > { %v1067_v34 = vpop.permute.xlu2 %1066 }
 0x1c0   : > { %2407 = vmatmul.msk.bf16.vlgmr.msra.gmra.mxu1 %vm903_vm4, %v896_v18 }
 0x1c1   : > { %1083 = vmatpush.bf16.xpose.msrb.mxu1 %v1074_v33 }
 0x1d0   : > { %2412 = vmatmul.msk.bf16.vlgmr.msrb.gmra.mxu1 %vm903_vm4, %v1067_v34 }
 0x23b   : > { %v943_v35 = vpop.f32.mrf.mxu2 }
 0x23c   : > { %v2997_v43 = vmul.f32 0.35355338, %v943_v35 }
 0x23d   : > { %v919_v36 = vpop.f32.mrf.mxu1 }
 0x23e   : > { %v947_v37 = vmul.f32 0.35355338, %v919_v36  ;;  %v952_v44 = vsel %vm903_vm4, %v2997_v43, -inf }
 0x240   : > { %v949_v38 = vsel %vm903_vm4, %v947_v37, -inf }
 0x241   : > { %950 = vmax.xlane.f32.xlu0 %v949_v38 }
 0x243   : > { %v945_v39 = vpop.f32.mrf.mxu2 }
 0x245   : > { %v921_v40 = vpop.f32.mrf.mxu1 }
 0x24d   : > { %v2991_v41 = vpop.f32.mrf.mxu1 }
 0x24e   : > { %v1090_v23 = vmul.f32 0.35355338, %v2991_v41 }
 0x250   : > { %v1094_v24 = vsel %vm903_vm4, %v1090_v23, -inf }
 0x255   : > { %1141 = vrot.lane.b32.xlu0 %v2970_v20, %s2738_s1  ;;  %v1087_v42 = vpop.f32.mrf.mxu1 }
 0x25d   : > { %1226 = vrot.lane.b32.xlu0 %v2970_v20, %s2739_s26 }
 0x287   : > { %953 = vmax.xlane.f32.xlu0 %v952_v44 }
 0x2b4   : > { %v951_v45 = vpop.xlane.xlu0 %950 }
 0x2b5   : > { %v955_v46 = vsub.f32 %v947_v37, %v951_v45 }
 0x2b7   : > { %v957_v47 = vmul.f32 1.442695, %v955_v46 }
 0x2b9   : > { %2629 = vpow2.f32 %v957_v47 }
 0x2bf   : > { %v2630_v48 = vpop.eup %2629 }
 0x2c0   : > { %v961_v49 = vsel %vm903_vm4, %v2630_v48, 0.0 }
 0x2c1   : > { %962 = vadd.xlane.f32.xlu1 %v961_v49 }
 0x2c7   : > { %v1142_v50 = vpop.permute.xlu0 %1141 }
 0x2c8   : > { %v1147_v51 = vsel %vm3289_vm5, %v1142_v50, 0 }
 0x2c9   : > { %1156 = vmatpush.bf16.msrb.mxu2 %v1147_v51 }
 0x2cf   : > { %v1227_v52 = vpop.permute.xlu0 %1226 }
 0x2d0   : > { %v1232_v53 = vsel %vm903_vm4, %v1227_v52, 0 }
 0x2d1   : > { %1241 = vmatpush.bf16.xpose.msra.mxu2 %v1232_v53 }
 0x2da   : > { %999 = vrot.lane.b32.xlu1 %v2970_v20, %s2740_s11 }
 0x2fa   : > { %v954_v17 = vpop.xlane.xlu0 %953 }
 0x2fb   : > { %v956_v19 = vsub.f32 %v2997_v43, %v954_v17 }
 0x2fd   : > { %v959_v22 = vmul.f32 1.442695, %v956_v19 }
 0x334   : > { %v963_v54 = vpop.xlane.xlu1 %962 }
 0x335   : > { %2631 = vrcp.f32 %v963_v54  ;;  %v978_v60 = vand.u32 2147483648, %v963_v54  ;;  %vm972_vm7 = vweird.f32 %v963_v54  ;;  %v976_v61 = vand.u32 2147483647, %v963_v54 }
 0x337   : > { %v979_v63 = vor.u32 1.1754944e-38, %v978_v60  ;;  %vm977_vm9 = vcmp.eq.f32.partialorder %v976_v61, 8.507059e+37 }
 0x33b   : > { %v2632_v55 = vpop.eup %2631 }
 0x33c   : > { %v968_v56 = vmul.f32 %v2632_v55, %v963_v54  ;;  %vm973_vm6 = vweird.f32 %v2632_v55 }
 0x33d   : > { %vm974_vm8 = vmor %vm972_vm7, %vm973_vm6 }
 0x33e   : > { %v969_v57 = vsub.f32 1.0, %v968_v56 }
 0x340   : > { %v970_v58 = vmul.f32 %v2632_v55, %v969_v57 }
 0x342   : > { %v971_v59 = vadd.f32 %v2632_v55, %v970_v58 }
 0x344   : > { %v975_v62 = vsel %vm974_vm8, %v2632_v55, %v971_v59 }
 0x345   : > { %v980_v0 = vsel %vm977_vm9, %v979_v63, %v975_v62  ;;  %v857_v63 = vld [vmem:[%s2888_s30] sm:$0xf] }
 0x346   : > { %v981_v1 = vmul.f32 %v2630_v48, %v980_v0  ;;  %v1208_v0 = vsel %vm3289_vm5, %v857_v63, 0 }
 0x347   : > { %1217 = vmatpush.bf16.msra.mxu1 %v1208_v0 }
 0x348   : > { %v997_v5 = vpack.c.bf16 %v981_v1, %v981_v1 }
 0x34c   : > { %v1000_v2 = vpop.permute.xlu1 %999 }
 0x34d   : > { %v1006_v3 = vsel %vm3289_vm5, %v1000_v2, 0 }
 0x34e   : > { %1015 = vmatpush.bf16.msrb.mxu0 %v1006_v3 }
 0x351   : > { %2409 = vmatmul.msk.bf16.vlgmr.msrb.gmra.mxu0 %vm903_vm4, %v997_v5 }
 0x352   : > { %1060 = vmatpush.bf16.xpose.msra.mxu0 %v1051_v4 }
 0x361   : > { %2411 = vmatmul.msk.bf16.vlgmr.msra.gmra.mxu0 %vm903_vm4, %v2982_v27 }
 0x3ce   : > { %v3012_v6 = vpop.f32.mrf.mxu0 }
 0x3d6   : > { %v1019_v7 = vpop.f32.mrf.mxu0 }
 0x3de   : > { %v1062_v8 = vpop.f32.mrf.mxu0 }
 0x3df   : > { %v1089_v9 = vmul.f32 0.35355338, %v1062_v8 }
 0x3e1   : > { %v1091_v10 = vsel %vm903_vm4, %v1089_v9, -inf }
 0x3e2   : > { %1092 = vmax.xlane.f32.xlu1 %v1091_v10 }
 0x3e6   : > { %v1064_v11 = vpop.f32.mrf.mxu0 }
 0x3fb   : > { %1224 = vrot.lane.b32.xlu1 %v2970_v20, %s2741_s23 }
 0x403   : > { %1021 = vrot.lane.b32.xlu1 %v2975_v25, %s2740_s11 }
 0x40b   : > { %1249 = vrot.lane.b32.xlu1 %v2975_v25, %s2739_s26  ;;  %s3322_s26 = scalar_lea.vmem %s3274_s8, %s2873_s19 }
 0x413   : > { %1247 = vrot.lane.b32.xlu1 %v2975_v25, %s2741_s23 }
 0x455   : > { %v1093_v14 = vpop.xlane.xlu1 %1092 }
 0x456   : > { %v1097_v15 = vsub.f32 %v1089_v9, %v1093_v14 }
 0x458   : > { %v1099_v16 = vmul.f32 1.442695, %v1097_v15 }
 0x45a   : > { %2633 = vpow2.f32 %v1099_v16 }
 0x45b   : > { %2635 = vpow2.f32 %v959_v22 }
 0x460   : > { %v2634_v18 = vpop.eup %2633 }
 0x461   : > { %v1103_v21 = vsel %vm903_vm4, %v2634_v18, 0.0  ;;  %v2636_v27 = vpop.eup %2635 }
 0x462   : > { %1104 = vadd.xlane.f32.xlu2 %v1103_v21  ;;  %v964_v28 = vsel %vm903_vm4, %v2636_v27, 0.0 }
 0x46a   : > { %1095 = vmax.xlane.f32.xlu2 %v1094_v24 }
 0x46d   : > { %v1225_v26 = vpop.permute.xlu1 %1224 }
 0x472   : > { %965 = vadd.xlane.f32.xlu2 %v964_v28 }
 0x475   : > { %v1022_v29 = vpop.permute.xlu1 %1021 }
 0x476   : > { %v1027_v30 = vsel %vm3289_vm5, %v1022_v29, 0 }
 0x477   : > { %1036 = vmatpush.bf16.msra.mxu3 %v1027_v30 }
 0x47d   : > { %v1250_v2 = vpop.permute.xlu1 %1249 }
 0x47e   : > { %v1255_v7 = vsel %vm903_vm4, %v1250_v2, 0 }
 0x4d5   : > { %v1105_v31 = vpop.xlane.xlu2 %1104 }
 0x4d6   : > { %2637 = vrcp.f32 %v1105_v31  ;;  %v1120_v37 = vand.u32 2147483648, %v1105_v31  ;;  %v1118_v40 = vand.u32 2147483647, %v1105_v31  ;;  %vm1114_vm11 = vweird.f32 %v1105_v31 }
 0x4d8   : > { %v1121_v42 = vor.u32 1.1754944e-38, %v1120_v37  ;;  %vm1119_vm13 = vcmp.eq.f32.partialorder %v1118_v40, 8.507059e+37 }
 0x4dc   : > { %v2638_v32 = vpop.eup %2637 }
 0x4dd   : > { %v1110_v33 = vmul.f32 %v2638_v32, %v1105_v31  ;;  %v1096_v34 = vpop.xlane.xlu2 %1095  ;;  %vm1115_vm10 = vweird.f32 %v2638_v32  ;;  %v1248_v31 = vpop.permute.xlu1 %1247 }
 0x4de   : > { %v1098_v35 = vsub.f32 %v1090_v23, %v1096_v34  ;;  %vm1116_vm12 = vmor %vm1114_vm11, %vm1115_vm10 }
 0x4df   : > { %v1111_v36 = vsub.f32 1.0, %v1110_v33 }
 0x4e0   : > { %v1101_v38 = vmul.f32 1.442695, %v1098_v35 }
 0x4e1   : > { %v1112_v39 = vmul.f32 %v2638_v32, %v1111_v36 }
 0x4e2   : > { %2639 = vpow2.f32 %v1101_v38 }
 0x4e3   : > { %v1113_v41 = vadd.f32 %v2638_v32, %v1112_v39 }
 0x4e5   : > { %v966_v43 = vpop.xlane.xlu2 %965  ;;  %v1117_v44 = vsel %vm1116_vm12, %v2638_v32, %v1113_v41 }
 0x4e6   : > { %2641 = vrcp.f32 %v966_v43  ;;  %v1122_v45 = vsel %vm1119_vm13, %v1121_v42, %v1117_v44  ;;  %v993_v53 = vand.u32 2147483648, %v966_v43  ;;  %v991_v55 = vand.u32 2147483647, %v966_v43 }
 0x4e7   : > { %v1123_v46 = vmul.f32 %v2634_v18, %v1122_v45  ;;  %vm987_vm15 = vweird.f32 %v966_v43 }
 0x4e8   : > { %v2640_v47 = vpop.eup %2639  ;;  %v994_v57 = vor.u32 1.1754944e-38, %v993_v53  ;;  %vm992_vm1 = vcmp.eq.f32.partialorder %v991_v55, 8.507059e+37 }
 0x4e9   : > { %v1106_v48 = vsel %vm903_vm4, %v2640_v47, 0.0  ;;  %v1139_v49 = vpack.c.bf16 %v1123_v46, %v1123_v46 }
 0x4ea   : > { %1107 = vadd.xlane.f32.xlu2 %v1106_v48 }
 0x4eb   : > { %2413 = vmatmul.msk.bf16.vlgmr.msrb.gmra.mxu2 %vm903_vm4, %v1139_v49 }
 0x4ec   : > { %v2642_v50 = vpop.eup %2641 }
 0x4ed   : > { %v983_v51 = vmul.f32 %v2642_v50, %v966_v43  ;;  %vm988_vm14 = vweird.f32 %v2642_v50 }
 0x4ee   : > { %vm989_vm0 = vmor %vm987_vm15, %vm988_vm14 }
 0x4ef   : > { %v984_v52 = vsub.f32 1.0, %v983_v51 }
 0x4f1   : > { %v985_v54 = vmul.f32 %v2642_v50, %v984_v52 }
 0x4f3   : > { %v986_v56 = vadd.f32 %v2642_v50, %v985_v54 }
 0x4f5   : > { %v990_v58 = vsel %vm989_vm0, %v2642_v50, %v986_v56 }
 0x4f6   : > { %v995_v59 = vsel %vm992_vm1, %v994_v57, %v990_v58 }
 0x4f7   : > { %v996_v60 = vmul.f32 %v2636_v27, %v995_v59 }
 0x4f9   : > { %v998_v61 = vpack.c.bf16 %v996_v60, %v996_v60 }
 0x4fb   : > { %2410 = vmatmul.msk.bf16.vlgmr.msra.gmra.mxu3 %vm903_vm4, %v998_v61  ;;  %2417 = vmatmul.msk.bf16.vlgmr.msra.gmra.mxu2 %vm903_vm4, %v1225_v26 }
 0x502   : > { %1162 = vrot.lane.b32.xlu2 %v2975_v25, %s2738_s1 }
 0x50a   : > { %1389 = vrot.lane.b32.xlu2 %v2970_v20, %s2742_s28 }
 0x512   : > { %1412 = vrot.lane.b32.xlu2 %v2975_v25, %s2742_s28  ;;  %s3323_s28 = scalar_lea.vmem %s3276_s10, %s2873_s19 }
 0x51a   : > { %1387 = vrot.lane.b32.xlu2 %v2970_v20, %s2743_s12 }
 0x55d   : > { %v1108_v62 = vpop.xlane.xlu2 %1107 }
 0x55e   : > { %2643 = vrcp.f32 %v1108_v62  ;;  %v1135_v9 = vand.u32 2147483648, %v1108_v62  ;;  %v1133_v11 = vand.u32 2147483647, %v1108_v62  ;;  %vm1129_vm6 = vweird.f32 %v1108_v62 }
 0x560   : > { %v1136_v15 = vor.u32 1.1754944e-38, %v1135_v9  ;;  %vm1134_vm8 = vcmp.eq.f32.partialorder %v1133_v11, 8.507059e+37 }
 0x564   : > { %v2644_v1 = vpop.eup %2643 }
 0x565   : > { %v1125_v3 = vmul.f32 %v2644_v1, %v1108_v62  ;;  %v1163_v4 = vpop.permute.xlu2 %1162  ;;  %vm1130_vm2 = vweird.f32 %v2644_v1 }
 0x566   : > { %v1168_v5 = vsel %vm3289_vm5, %v1163_v4, 0  ;;  %vm1131_vm7 = vmor %vm1129_vm6, %vm1130_vm2 }
 0x567   : > { %v1126_v8 = vsub.f32 1.0, %v1125_v3  ;;  %1177 = vmatpush.bf16.msrb.mxu3 %v1168_v5 }
 0x569   : > { %v1127_v10 = vmul.f32 %v2644_v1, %v1126_v8 }
 0x56b   : > { %1264 = vmatpush.bf16.xpose.msra.mxu3 %v1255_v7  ;;  %v1128_v14 = vadd.f32 %v2644_v1, %v1127_v10 }
 0x56d   : > { %v1132_v16 = vsel %vm1131_vm7, %v2644_v1, %v1128_v14  ;;  %v1390_v21 = vpop.permute.xlu2 %1389 }
 0x56e   : > { %v1158_v17 = vpop.f32.mrf.mxu2  ;;  %v1137_v18 = vsel %vm1134_vm8, %v1136_v15, %v1132_v16  ;;  %v1395_v23 = vsel %vm903_vm4, %v1390_v21, 0 }
 0x56f   : > { %v1138_v19 = vmul.f32 %v2640_v47, %v1137_v18 }
 0x571   : > { %v1140_v22 = vpack.c.bf16 %v1138_v19, %v1138_v19 }
 0x573   : > { %2414 = vmatmul.msk.bf16.vlgmr.msrb.gmra.mxu3 %vm903_vm4, %v1140_v22 }
 0x574   : > { %1404 = vmatpush.bf16.xpose.msrb.mxu3 %v1395_v23 }
 0x575   : > { %v1413_v34 = vpop.permute.xlu2 %1412 }
 0x576   : > { %v1160_v24 = vpop.f32.mrf.mxu2  ;;  %v1418_v50 = vsel %vm903_vm4, %v1413_v34, 0 }
 0x57d   : > { %v1388_v35 = vpop.permute.xlu2 %1387 }
 0x57e   : > { %v1038_v26 = vpop.f32.mrf.mxu3  ;;  %v1243_v27 = vpop.f32.mrf.mxu2 }
 0x57f   : > { %v1042_v28 = vpack.c.bf16 %v1038_v26, %v3012_v6  ;;  %v1270_v29 = vmul.f32 0.35355338, %v1243_v27  ;;  %v858_v6 = vld [vmem:[%s2888_s30 + $0x4] sm:$0xf] }
 0x580   : > { %v1188_v36 = vsel %vm3289_vm5, %v858_v6, 0 }
 0x581   : > { %2416 = vmatmul.msk.bf16.vlgmr.msra.gmra.mxu1 %vm903_vm4, %v1042_v28  ;;  %v1272_v30 = vsel %vm903_vm4, %v1270_v29, -inf  ;;  %1197 = vmatpush.bf16.msrb.mxu0 %v1188_v36 }
 0x582   : > { %1273 = vmax.xlane.f32.xlu0 %v1272_v30 }
 0x583   : > { %2418 = vmatmul.msk.bf16.vlgmr.msra.gmra.mxu3 %vm903_vm4, %v1248_v31 }
 0x586   : > { %v1040_v32 = vpop.f32.mrf.mxu3  ;;  %v1245_v33 = vpop.f32.mrf.mxu2 }
 0x593   : > { %2422 = vmatmul.msk.bf16.vlgmr.msrb.gmra.mxu3 %vm903_vm4, %v1388_v35 }
 0x596   : > { %1322 = vrot.lane.b32.xlu0 %v2970_v20, %s2744_s20 }
 0x59e   : > { %1410 = vrot.lane.b32.xlu0 %v2975_v25, %s2743_s12 }
 0x5f5   : > { %v1274_v37 = vpop.xlane.xlu0 %1273 }
 0x5f6   : > { %v1278_v38 = vsub.f32 %v1270_v29, %v1274_v37  ;;  %v1179_v39 = vpop.f32.mrf.mxu3 }
 0x5f7   : > { %v1183_v40 = vpack.c.bf16 %v1179_v39, %v1158_v17 }
 0x5f8   : > { %v1280_v41 = vmul.f32 1.442695, %v1278_v38 }
 0x5f9   : > { %2415 = vmatmul.msk.bf16.vlgmr.msrb.gmra.mxu0 %vm903_vm4, %v1183_v40 }
 0x5fa   : > { %2645 = vpow2.f32 %v1280_v41 }
 0x5fe   : > { %v1181_v42 = vpop.f32.mrf.mxu3 }
 0x600   : > { %v2646_v43 = vpop.eup %2645 }
 0x601   : > { %v1284_v44 = vsel %vm903_vm4, %v2646_v43, 0.0 }
 0x602   : > { %1285 = vadd.xlane.f32.xlu1 %v1284_v44 }
 0x606   : > { %v1266_v45 = vpop.f32.mrf.mxu3 }
 0x607   : > { %v1271_v46 = vmul.f32 0.35355338, %v1266_v45 }
 0x608   : > { %v1323_v47 = vpop.permute.xlu0 %1322 }
 0x609   : > { %v1328_v48 = vsel %vm3289_vm5, %v1323_v47, 0  ;;  %v1275_v49 = vsel %vm903_vm4, %v1271_v46, -inf }
 0x60a   : > { %1337 = vmatpush.bf16.msra.mxu0 %v1328_v48  ;;  %1276 = vmax.xlane.f32.xlu2 %v1275_v49 }
 0x60e   : > { %1427 = vmatpush.bf16.xpose.msrb.mxu0 %v1418_v50  ;;  %v1268_v51 = vpop.f32.mrf.mxu3 }
 0x610   : > { %v1411_v21 = vpop.permute.xlu0 %1410 }
 0x616   : > { %v1406_v52 = vpop.f32.mrf.mxu3 }
 0x617   : > { %v1433_v53 = vmul.f32 0.35355338, %v1406_v52 }
 0x619   : > { %v1435_v54 = vsel %vm903_vm4, %v1433_v53, -inf }
 0x61a   : > { %1436 = vmax.xlane.f32.xlu2 %v1435_v54 }
 0x61b   : > { %1343 = vrot.lane.b32.xlu1 %v2975_v25, %s2744_s20 }
 0x61e   : > { %v1408_v55 = vpop.f32.mrf.mxu3 }
 0x675   : > { %v1286_v56 = vpop.xlane.xlu1 %1285 }
 0x676   : > { %2647 = vrcp.f32 %v1286_v56  ;;  %v1301_v62 = vand.u32 2147483648, %v1286_v56  ;;  %v1299_v1 = vand.u32 2147483647, %v1286_v56  ;;  %vm1295_vm10 = vweird.f32 %v1286_v56  ;;  %v3069_v22 = vpop.f32.mrf.mxu0 }
 0x678   : > { %v1302_v3 = vor.u32 1.1754944e-38, %v1301_v62  ;;  %vm1300_vm12 = vcmp.eq.f32.partialorder %v1299_v1, 8.507059e+37 }
 0x67c   : > { %v2648_v57 = vpop.eup %2647 }
 0x67d   : > { %v1291_v58 = vmul.f32 %v2648_v57, %v1286_v56  ;;  %v1277_v59 = vpop.xlane.xlu2 %1276  ;;  %vm1296_vm9 = vweird.f32 %v2648_v57 }
 0x67e   : > { %v1279_v60 = vsub.f32 %v1271_v46, %v1277_v59  ;;  %vm1297_vm11 = vmor %vm1295_vm10, %vm1296_vm9  ;;  %v3071_v24 = vpop.f32.mrf.mxu0  ;;  %v1219_v59 = vpop.f32.mrf.mxu1 }
 0x67f   : > { %v1292_v61 = vsub.f32 1.0, %v1291_v58 }
 0x680   : > { %v1282_v63 = vmul.f32 1.442695, %v1279_v60 }
 0x681   : > { %v1293_v0 = vmul.f32 %v2648_v57, %v1292_v61 }
 0x682   : > { %2649 = vpow2.f32 %v1282_v63 }
 0x683   : > { %v1294_v2 = vadd.f32 %v2648_v57, %v1293_v0 }
 0x685   : > { %v1298_v4 = vsel %vm1297_vm11, %v2648_v57, %v1294_v2  ;;  %v859_v57 = vld [vmem:[%s2888_s30 + $0x8] sm:$0xf] }
 0x686   : > { %v1303_v5 = vsel %vm1300_vm12, %v1302_v3, %v1298_v4  ;;  %v1369_v58 = vsel %vm3289_vm5, %v859_v57, 0  ;;  %v1221_v60 = vpop.f32.mrf.mxu1 }
 0x687   : > { %v1304_v7 = vmul.f32 %v2646_v43, %v1303_v5  ;;  %1378 = vmatpush.bf16.msrb.mxu2 %v1369_v58 }
 0x688   : > { %v2650_v8 = vpop.eup %2649 }
 0x689   : > { %v1287_v9 = vsel %vm903_vm4, %v2650_v8, 0.0  ;;  %v1320_v10 = vpack.c.bf16 %v1304_v7, %v1304_v7 }
 0x68a   : > { %1288 = vadd.xlane.f32.xlu0 %v1287_v9  ;;  %v1220_v9 = vadd.f32 %v1219_v59, %v3069_v22 }
 0x68b   : > { %2419 = vmatmul.msk.bf16.vlgmr.msra.gmra.mxu0 %vm903_vm4, %v1320_v10 }
 0x68d   : > { %v1344_v11 = vpop.permute.xlu1 %1343  ;;  %v1437_v14 = vpop.xlane.xlu2 %1436 }
 0x68e   : > { %v1349_v15 = vsel %vm3289_vm5, %v1344_v11, 0  ;;  %v1441_v16 = vsub.f32 %v1433_v53, %v1437_v14 }
 0x68f   : > { %1358 = vmatpush.bf16.msrb.mxu1 %v1349_v15 }
 0x690   : > { %v1443_v17 = vmul.f32 1.442695, %v1441_v16 }
 0x692   : > { %2651 = vpow2.f32 %v1443_v17 }
 0x698   : > { %v2652_v18 = vpop.eup %2651 }
 0x699   : > { %v1447_v19 = vsel %vm903_vm4, %v2652_v18, 0.0 }
 0x69a   : > { %1448 = vadd.xlane.f32.xlu2 %v1447_v19 }
 0x69b   : > { %2423 = vmatmul.msk.bf16.vlgmr.msrb.gmra.mxu0 %vm903_vm4, %v1411_v21 }
 0x6b2   : > { %1485 = vrot.lane.b32.xlu2 %v2970_v20, %s2745_s2 }
 0x6fd   : > { %v1289_v23 = vpop.xlane.xlu0 %1288 }
 0x6fe   : > { %2653 = vrcp.f32 %v1289_v23  ;;  %v1316_v29 = vand.u32 2147483648, %v1289_v23  ;;  %v1314_v32 = vand.u32 2147483647, %v1289_v23  ;;  %vm1310_vm14 = vweird.f32 %v1289_v23 }
 0x700   : > { %v1317_v34 = vor.u32 1.1754944e-38, %v1316_v29  ;;  %vm1315_vm0 = vcmp.eq.f32.partialorder %v1314_v32, 8.507059e+37 }
 0x704   : > { %v2654_v26 = vpop.eup %2653 }
 0x705   : > { %v1306_v27 = vmul.f32 %v2654_v26, %v1289_v23  ;;  %vm1311_vm13 = vweird.f32 %v2654_v26 }
 0x706   : > { %vm1312_vm15 = vmor %vm1310_vm14, %vm1311_vm13 }
 0x707   : > { %v1307_v28 = vsub.f32 1.0, %v1306_v27 }
 0x708   : > { %v1339_v30 = vpop.f32.mrf.mxu0 }
 0x709   : > { %v1308_v31 = vmul.f32 %v2654_v26, %v1307_v28 }
 0x70b   : > { %v1309_v33 = vadd.f32 %v2654_v26, %v1308_v31 }
 0x70d   : > { %v1313_v35 = vsel %vm1312_vm15, %v2654_v26, %v1309_v33  ;;  %v1449_v20 = vpop.xlane.xlu2 %1448 }
 0x70e   : > { %v1318_v6 = vsel %vm1315_vm0, %v1317_v34, %v1313_v35  ;;  %2655 = vrcp.f32 %v1449_v20  ;;  %v1464_v44 = vand.u32 2147483648, %v1449_v20  ;;  %v1462_v47 = vand.u32 2147483647, %v1449_v20 }
 0x70f   : > { %v1319_v36 = vmul.f32 %v2650_v8, %v1318_v6  ;;  %vm1458_vm2 = vweird.f32 %v1449_v20 }
 0x710   : > { %v1341_v37 = vpop.f32.mrf.mxu0  ;;  %v1465_v51 = vor.u32 1.1754944e-38, %v1464_v44  ;;  %vm1463_vm7 = vcmp.eq.f32.partialorder %v1462_v47, 8.507059e+37  ;;  %v2746_v47 = vmov 32.0  }
 0x711   : > { %v1321_v38 = vpack.c.bf16 %v1319_v36, %v1319_v36 }
 0x713   : > { %2420 = vmatmul.msk.bf16.vlgmr.msrb.gmra.mxu1 %vm903_vm4, %v1321_v38  ;;  %v1222_v38 = vadd.f32 %v1221_v60, %v3071_v24 }
 0x714   : > { %v2656_v39 = vpop.eup %2655 }
 0x715   : > { %v1454_v40 = vmul.f32 %v2656_v39, %v1449_v20  ;;  %v1486_v41 = vpop.permute.xlu2 %1485  ;;  %vm1459_vm1 = vweird.f32 %v2656_v39  ;;  %v2623_v20 = vld [vmem:[%s3320_s21] ss:$0 sm:$0xff] }
 0x716   : > { %v1491_v42 = vsel %vm3289_vm5, %v1486_v41, 0  ;;  %vm1460_vm6 = vmor %vm1458_vm2, %vm1459_vm1 }
 0x717   : > { %v1455_v43 = vsub.f32 1.0, %v1454_v40  ;;  %1500 = vmatpush.bf16.msra.mxu1 %v1491_v42 }
 0x718   : > { %v1429_v45 = vpop.f32.mrf.mxu0 }
 0x719   : > { %v1456_v46 = vmul.f32 %v2656_v39, %v1455_v43  ;;  %v1434_v48 = vmul.f32 0.35355338, %v1429_v45 }
 0x71b   : > { %v1457_v49 = vadd.f32 %v2656_v39, %v1456_v46  ;;  %v1438_v50 = vsel %vm903_vm4, %v1434_v48, -inf }
 0x71c   : > { %1439 = vmax.xlane.f32.xlu1 %v1438_v50 }
 0x71d   : > { %v1461_v52 = vsel %vm1460_vm6, %v2656_v39, %v1457_v49 }
 0x71e   : > { %v1466_v53 = vsel %vm1463_vm7, %v1465_v51, %v1461_v52 }
 0x71f   : > { %v1467_v54 = vmul.f32 %v2652_v18, %v1466_v53 }
 0x720   : > { %v1431_v55 = vpop.f32.mrf.mxu0 }
 0x721   : > { %v1483_v56 = vpack.c.bf16 %v1467_v54, %v1467_v54 }
 0x723   : > { %2424 = vmatmul.msk.bf16.vlgmr.msra.gmra.mxu1 %vm903_vm4, %v1483_v56 }
 0x78f   : > { %v1440_v61 = vpop.xlane.xlu1 %1439 }
 0x790   : > { %v1442_v62 = vsub.f32 %v1434_v48, %v1440_v61  ;;  %v1360_v63 = vpop.f32.mrf.mxu1  ;;  %v1624_v61 = vld [vmem:[%s2906_s25 + $0x18] sm:$0xff] }
 0x791   : > { %v1364_v0 = vpack.c.bf16 %v1360_v63, %v1339_v30  ;;  %v860_v30 = vld [vmem:[%s2888_s30 + $0xc] sm:$0xf]  ;;  %1647 = vmatpush.msra.mxu0 %v1624_v61  ;;  %2560 = vmatpush.msrb.mxu1 %v1624_v61 }
 0x792   : > { %v1445_v1 = vmul.f32 1.442695, %v1442_v62  ;;  %v1532_v31 = vsel %vm3289_vm5, %v860_v30, 0  ;;  %v1623_v62 = vld [vmem:[%s2906_s25 + $0x10] sm:$0xff]  ;;  %v1622_v63 = vld [vmem:[%s2906_s25 + $0x8] sm:$0xff] }
 0x793   : > { %2421 = vmatmul.msk.bf16.vlgmr.msrb.gmra.mxu2 %vm903_vm4, %v1364_v0  ;;  %1541 = vmatpush.bf16.msra.mxu3 %v1532_v31  ;;  %v1621_v0 = vld [vmem:[%s2906_s25] sm:$0xff]  ;;  %s3321_s25 = scalar_lea.vmem %s3273_s7, %s2873_s19 }
 0x794   : > { %2657 = vpow2.f32 %v1445_v1  ;;  %1648 = vmatpush.msra.mxu0 %v1623_v62  ;;  %2561 = vmatpush.msrb.mxu1 %v1623_v62  ;;  %v2542_v1 = vld [vmem:[%s2915_s18 + $0x14] sm:$0xf] }
 0x796   : > { %1649 = vmatpush.msra.mxu0 %v1622_v63  ;;  %2562 = vmatpush.msrb.mxu1 %v1622_v63 }
 0x798   : > { %v1362_v2 = vpop.f32.mrf.mxu1  ;;  %1650 = vmatpush.msra.mxu0 %v1621_v0  ;;  %2563 = vmatpush.msrb.mxu1 %v1621_v0 }
 0x799   : > { %v2449_v2 = vld [vmem:[%s2915_s18 + $0x18] sm:$0xf0] }
 0x79a   : > { %v2658_v3 = vpop.eup %2657 }
 0x79b   : > { %v1450_v4 = vsel %vm903_vm4, %v2658_v3, 0.0 }
 0x79c   : > { %1451 = vadd.xlane.f32.xlu0 %v1450_v4 }
 0x7a0   : > { %v1502_v5 = vpop.f32.mrf.mxu1 }
 0x7a8   : > { %v1504_v7 = vpop.f32.mrf.mxu1 }
 0x7a9   : > { %v2540_v7 = vld [vmem:[%s2915_s18 + $0x4] sm:$0xf] }
 0x7b0   : > { %1506 = vrot.lane.b32.xlu0 %v2975_v25, %s2745_s2  ;;  %s3331_s2 = sld [smem:[#allocation18_spill]] }
 0x80f   : > { %v1452_v8 = vpop.xlane.xlu0 %1451 }
 0x810   : > { %2659 = vrcp.f32 %v1452_v8  ;;  %v1479_v17 = vand.u32 2147483648, %v1452_v8  ;;  %v1477_v19 = vand.u32 2147483647, %v1452_v8  ;;  %vm1473_vm9 = vweird.f32 %v1452_v8 }
 0x811   : > { %2661 = vrcp.f32 %v2746_v47  ;;  %v2749_v47 = vmov 0  }
 0x812   : > { %v1480_v23 = vor.u32 1.1754944e-38, %v1479_v17  ;;  %vm1478_vm11 = vcmp.eq.f32.partialorder %v1477_v19, 8.507059e+37  ;;  %v2541_v17 = vld [vmem:[%s2915_s18 + $0x4] sm:$0xf0]  ;;  %2614 = vset.pattern.permute.xlu1 %v2749_v47 }
 0x816   : > { %v2660_v10 = vpop.eup %2659  ;;  %v1380_v11 = vpop.f32.mrf.mxu2 }
 0x817   : > { %v1469_v14 = vmul.f32 %v2660_v10, %v1452_v8  ;;  %v1385_v15 = vadd.f32 %v1380_v11, %v1220_v9  ;;  %vm1474_vm8 = vweird.f32 %v2660_v10  ;;  %v2662_v48 = vpop.eup %2661  ;;  %v2441_v8 = vld [vmem:[%s2915_s18 + $0x8] sm:$0xf0]  ;;  %v2447_v11 = vld [vmem:[%s2915_s18 + $0x10] sm:$0xf] }
 0x818   : > { %vm1475_vm10 = vmor %vm1473_vm9, %vm1474_vm8  ;;  %v1567_v49 = vmul.f32 32.0, %v2662_v48  ;;  %v2444_v9 = vor.u32 %v2540_v7, %v2441_v8 }
 0x819   : > { %v1470_v16 = vsub.f32 1.0, %v1469_v14  ;;  %v2543_v14 = vld [vmem:[%s2915_s18 + $0x14] sm:$0xf0] }
 0x81a   : > { %v1568_v50 = vsub.f32 1.0, %v1567_v49 }
 0x81b   : > { %v1471_v18 = vmul.f32 %v2660_v10, %v1470_v16  ;;  %v2439_v16 = vld [vmem:[%s2915_s18] sm:$0xf] }
 0x81c   : > { %v1569_v24 = vmul.f32 %v2662_v48, %v1568_v50  ;;  %v2440_v19 = vor.u32 %v2541_v17, %v2439_v16 }
 0x81d   : > { %v1472_v21 = vadd.f32 %v2660_v10, %v1471_v18 }
 0x81e   : > { %v1382_v32 = vpop.f32.mrf.mxu2 }
 0x81f   : > { %v1476_v26 = vsel %vm1475_vm10, %v2660_v10, %v1472_v21  ;;  %v1386_v40 = vadd.f32 %v1382_v32, %v1222_v38  ;;  %v2624_v32 = vld [vmem:[%s3321_s25] ss:$0 sm:$0xff] }
 0x820   : > { %v1481_v25 = vsel %vm1478_vm11, %v1480_v23, %v1476_v26 }
 0x821   : > { %v1482_v27 = vmul.f32 %v2658_v3, %v1481_v25  ;;  %v2452_v3 = vor.u32 %v2542_v1, %v2449_v2 }
 0x822   : > { %v1507_v22 = vpop.permute.xlu0 %1506 }
 0x823   : > { %v1512_v28 = vsel %vm3289_vm5, %v1507_v22, 0  ;;  %v1484_v29 = vpack.c.bf16 %v1482_v27, %v1482_v27 }
 0x824   : > { %1521 = vmatpush.bf16.msra.mxu2 %v1512_v28 }
 0x827   : > { %2425 = vmatmul.msk.bf16.vlgmr.msra.gmra.mxu2 %vm903_vm4, %v1484_v29 }
 0x828   : > { %1837 = vmatpush.bf16.msrb.mxu2 %v2452_v3 }
 0x82c   : > { %1838 = vmatpush.bf16.msrb.mxu2 %v2444_v9 }
 0x8aa   : > { %v1523_v33 = vpop.f32.mrf.mxu2 }
 0x8ab   : > { %v1527_v34 = vpack.c.bf16 %v1523_v33, %v1502_v5 }
 0x8ad   : > { %2426 = vmatmul.msk.bf16.vlgmr.msra.gmra.mxu3 %vm903_vm4, %v1527_v34  ;;  %vm1571_vm4 = vweird.f32 %v2662_v48 }
 0x8b2   : > { %v1525_v35 = vpop.f32.mrf.mxu2 }
 0x930   : > { %v1543_v6 = vpop.f32.mrf.mxu3 }
 0x931   : > { %v1548_v36 = vadd.f32 %v1543_v6, %v1385_v15  ;;  %v2448_v15 = vor.u32 %v2543_v14, %v2447_v11 }
 0x933   : > { %v1554_v37 = vadd.f32 %v2623_v20, %v1548_v36  ;;  %1823 = vmatpush.bf16.msra.mxu1 %v2448_v15 }
 0x935   : > { %v1556_v39 = vadd.f32 %v1554_v37, %v2958_v12  ;;  %v1570_v12 = vadd.f32 %v2662_v48, %v1569_v24 }
 0x937   : > { %v1560_v41 = vsel %vm3288_vm3, %v1556_v39, 0.0  ;;  %v3099_v51 = vsel %vm1571_vm4, %v2662_v48, %v1570_v12  ;;  %1824 = vmatpush.bf16.msra.mxu1 %v2440_v19  ;;  %v2626_v48 = vld [vmem:[%s3323_s28] ss:$0 sm:$0xff] }
 0x938   : > { %v1545_v42 = vpop.f32.mrf.mxu3  ;;  %1561 = vadd.xlane.f32.xlu0 %v1560_v41 }
 0x939   : > { %v1549_v43 = vadd.f32 %v1545_v42, %v1386_v40 }
 0x93b   : > { %v1555_v44 = vadd.f32 %v2623_v20, %v1549_v43  ;;  %v2625_v20 = vld [vmem:[%s3322_s26] ss:$0 sm:$0xff] }
 0x93d   : > { %v1557_v45 = vadd.f32 %v1555_v44, %v2960_v13 }
 0x93f   : > { %v1563_v46 = vsel %vm3288_vm3, %v1557_v45, 0.0 }
 0x940   : > { %1564 = vadd.xlane.f32.xlu1 %v1563_v46  ;;  %v2748_v46 = vmov 1  }
 0x941   : > { %2615 = vset.pattern.permute.xlu0 %v2748_v46 }
 0x9ab   : > { %v1562_v52 = vpop.xlane.xlu0 %1561 }
 0x9ac   : > { %v1573_v53 = vmul.f32 %v3099_v51, %v1562_v52  ;;  %v2750_v52 = vmov 2  }
 0x9ae   : > { %v1575_v54 = vsub.f32 %v1556_v39, %v1573_v53  ;;  %v1658_v53 = vlaneseq }
 0x9b0   : > { %v1577_v13 = vmul.f32 %v1575_v54, %v1575_v54 }
 0x9b2   : > { %v1579_v55 = vsel %vm3288_vm3, %v1577_v13, 0.0 }
 0x9b3   : > { %v1565_v56 = vpop.xlane.xlu1 %1564  ;;  %1580 = vadd.xlane.f32.xlu2 %v1579_v55 }
 0x9b4   : > { %v1574_v57 = vmul.f32 %v3099_v51, %v1565_v56 }
 0x9b6   : > { %v3104_v58 = vsub.f32 %v1557_v45, %v1574_v57  ;;  %v2747_v45 = vmov 3   ;;  %v2751_v57 = vmov 0.0  }
 0x9b7   : > { %2617 = vset.pattern.permute.xlu2 %v2747_v45 }
 0x9b8   : > { %v1578_v59 = vmul.f32 %v3104_v58, %v3104_v58 }
 0x9ba   : > { %v1582_v60 = vsel %vm3288_vm3, %v1578_v59, 0.0 }
 0x9bb   : > { %1583 = vadd.xlane.f32.xlu1 %v1582_v60 }
 0xa26   : > { %v1581_v4 = vpop.xlane.xlu2 %1580 }
 0xa27   : > { %v1585_v5 = vmul.f32 %v1581_v4, %v3099_v51 }
 0xa29   : > { %v1587_v10 = vadd.f32 1e-05, %v1585_v5 }
 0xa2b   : > { %2663 = vrsqrt.f32 %v1587_v10  ;;  %vm1595_vm13 = vweird.f32 %v1587_v10 }
 0xa2e   : > { %v1584_v18 = vpop.xlane.xlu1 %1583 }
 0xa2f   : > { %v1586_v21 = vmul.f32 %v1584_v18, %v3099_v51 }
 0xa31   : > { %v2664_v23 = vpop.eup %2663  ;;  %v1588_v26 = vadd.f32 1e-05, %v1586_v21 }
 0xa32   : > { %v1590_v25 = vmul.f32 %v2664_v23, %v1587_v10  ;;  %vm1596_vm12 = vweird.f32 %v2664_v23 }
 0xa33   : > { %2665 = vrsqrt.f32 %v1588_v26  ;;  %vm1597_vm14 = vmor %vm1595_vm13, %vm1596_vm12  ;;  %vm1605_vm0 = vweird.f32 %v1588_v26 }
 0xa34   : > { %v1591_v27 = vmul.f32 %v2664_v23, %v1590_v25 }
 0xa36   : > { %v1592_v22 = vmul.f32 0.5, %v1591_v27 }
 0xa38   : > { %v1593_v28 = vsub.f32 1.5, %v1592_v22 }
 0xa39   : > { %v2666_v29 = vpop.eup %2665 }
 0xa3a   : > { %v1594_v30 = vmul.f32 %v2664_v23, %v1593_v28  ;;  %v1600_v31 = vmul.f32 %v2666_v29, %v1588_v26  ;;  %vm1606_vm15 = vweird.f32 %v2666_v29 }
 0xa3b   : > { %vm1607_vm1 = vmor %vm1605_vm0, %vm1606_vm15 }
 0xa3c   : > { %v1598_v33 = vsel %vm1597_vm14, %v2664_v23, %v1594_v30  ;;  %v1601_v34 = vmul.f32 %v2666_v29, %v1600_v31 }
 0xa3d   : > { %v1609_v35 = vmul.f32 %v1598_v33, %v1575_v54  ;;  %v1659_v54 = vand.u32 127, %v1658_v53  ;;  %v2547_v53 = vld [vmem:[%s2927_s4 + $0x18] sm:$0xff] }
 0xa3e   : > { %v1602_v6 = vmul.f32 0.5, %v1601_v34  ;;  %v1849_v34 = vld [vmem:[%s3331_s2] sm:$0xff] }
 0xa3f   : > { %v1614_v36 = vmul.f32 %v2624_v32, %v1609_v35  ;;  %vm3290_vm2 = vcmp.gt.s32.totalorder %v1659_v54, 1  ;;  %vm3291_vm7 = vcmp.gt.s32.totalorder %v1659_v54, 0  ;;  %vm1743_vm12 = vcmp.gt.s32.totalorder %v1659_v54, 3  ;;  %1851 = vst [vmem:[#allocation1] ss:$2 sm:$0xff] %v1849_v34 }
 0xa40   : > { %v1603_v37 = vsub.f32 1.5, %v1602_v6  ;;  %v1948_v35 = vld [vmem:[%s2933_s5] sm:$0xf] }
 0xa41   : > { %v3133_v38 = vadd.f32 %v2625_v20, %v1614_v36 }
 0xa42   : > { %v1604_v39 = vmul.f32 %v2666_v29, %v1603_v37 }
 0xa43   : > { %2427 = vmatmul.msk.f32.vlgmr.msra.gmra.mxu0 %vm3288_vm3, %v3133_v38 }
 0xa44   : > { %v1608_v40 = vsel %vm1607_vm1, %v2666_v29, %v1604_v39 }
 0xa45   : > { %v1610_v41 = vmul.f32 %v1608_v40, %v3104_v58 }
 0xa46   : > { %v1853_v6 = vld.sshfl [vmem:[#allocation1 + $0x8] sm:$0xff pattern:$0x75316420] }
 0xa47   : > { %v1615_v42 = vmul.f32 %v2624_v32, %v1610_v41 }
 0xa49   : > { %v3138_v43 = vadd.f32 %v2625_v20, %v1615_v42  ;;  %v1852_v20 = vld.sshfl [vmem:[#allocation1] sm:$0xff pattern:$0x75316420] }
 0xa4b   : > { %2428 = vmatmul.msk.f32.vlgmr.msrb.gmra.mxu1 %vm3288_vm3, %v3138_v43  ;;  %v1783_v44 = vpack.c.bf16 %v3138_v43, %v3133_v38 }
 0xa4d   : > { %2454 = vmatmul.msk.bf16.vlgmr.msrb.gmra.mxu2 %vm3288_vm3, %v1783_v44 }
 0xa53   : > { %2453 = vmatmul.msk.bf16.vlgmr.msra.gmra.mxu1 %vm3288_vm3, %v1783_v44  ;;  %vm3294_vm3 = vcmp.gt.s32.totalorder %v1659_v54, 2  ;;  %v2559_v44 = vld [vmem:[%s2927_s4 + $0x78] sm:$0xff] }
 0xac0   : > { %v1652_v49 = vpop.f32.mrf.mxu0 }
 0xac1   : > { %v3151_v50 = vadd.f32 %v2626_v48, %v1652_v49  ;;  %v2556_v49 = vld [vmem:[%s2927_s4 + $0x60] sm:$0xff] }
 0xac3   : > { %1732 = vperm.xlu2 %2617, %v3151_v50   ;;  %1686 = vperm.xlu0 %2615, %v3151_v50  }
 0xac4   : > { %1662 = vperm.xlu1 %2614, %v3151_v50  }
 0xac8   : > { %v1655_v24 = vpop.f32.mrf.mxu1 }
 0xac9   : > { %v3156_v12 = vadd.f32 %v2626_v48, %v1655_v24  ;;  %v2550_v48 = vld [vmem:[%s2927_s4 + $0x30] sm:$0xff]  ;;  %v2555_v24 = vld [vmem:[%s2927_s4 + $0x58] sm:$0xff] }
 0xacb   : > { %1736 = vperm.xlu2 %2617, %v3156_v12   ;;  %2621 = vset.pattern.permute.xlu0 %v2747_v45  ;;  %v2558_v45 = vld [vmem:[%s2927_s4 + $0x70] sm:$0xff] }
 0xacc   : > { %2616 = vset.pattern.permute.xlu1 %v2750_v52 }
 0xacd   : > { %1709 = vperm.xlu1 %2616, %v3151_v50  }
 0xad5   : > { %2618 = vset.pattern.permute.xlu1 %v2749_v47  ;;  %v2557_v47 = vld [vmem:[%s2927_s4 + $0x68] sm:$0xff] }
 0xad6   : > { %1667 = vperm.xlu1 %2618, %v3156_v12  }
 0xade   : > { %2619 = vset.pattern.permute.xlu1 %v2748_v46  ;;  %v2551_v46 = vld [vmem:[%s2927_s4 + $0x38] sm:$0xff] }
 0xadf   : > { %1690 = vperm.xlu1 %2619, %v3156_v12   ;;  %2071 = vmatpush.bf16.msra.mxu2 %v2551_v46 }
 0xae3   : > { %2072 = vmatpush.bf16.msra.mxu2 %v2550_v48 }
 0xae7   : > { %2620 = vset.pattern.permute.xlu1 %v2750_v52  ;;  %v2554_v52 = vld [vmem:[%s2927_s4 + $0x50] sm:$0xff] }
 0xae8   : > { %1713 = vperm.xlu1 %2620, %v3156_v12  }
 0xb1d   : > { %v1733_v56 = vpop.permute.xlu2 %1732 }
 0xb1e   : > { %vm1741_vm13 = vcmp.eq.f32.partialorder %v1733_v56, %v3151_v50  ;;  %vm1739_vm0 = vcmp.gt.f32.partialorder %v1733_v56, %v3151_v50  ;;  %v2545_v56 = vld [vmem:[%s2927_s4 + $0x8] sm:$0xff] }
 0xb1f   : > { %vm1744_vm1 = vmand %vm1741_vm13, %vm1743_vm12 }
 0xb20   : > { %vm1746_vm5 = vmor %vm1739_vm0, %vm1744_vm1 }
 0xb21   : > { %v2435_v0 = vsel %vm1746_vm5, 1.0, %v2751_v57 }
 0xb25   : > { %v1737_v7 = vpop.permute.xlu2 %1736 }
 0xb26   : > { %vm1742_vm13 = vcmp.eq.f32.partialorder %v1737_v7, %v3156_v12 }
 0xb35   : > { %v1687_v13 = vpop.permute.xlu0 %1686 }
 0xb36   : > { %vm1695_vm6 = vcmp.eq.f32.partialorder %v1687_v13, %v3151_v50  ;;  %v1663_v55 = vpop.permute.xlu1 %1662  ;;  %vm1693_vm9 = vcmp.gt.f32.partialorder %v1687_v13, %v3151_v50  ;;  %v2546_v13 = vld [vmem:[%s2927_s4 + $0x10] sm:$0xff] }
 0xb37   : > { %vm1672_vm8 = vcmp.eq.f32.partialorder %v1663_v55, %v3151_v50  ;;  %vm1698_vm10 = vmand %vm1695_vm6, %vm3290_vm2  ;;  %vm1670_vm11 = vcmp.gt.f32.partialorder %v1663_v55, %v3151_v50  ;;  %v2552_v55 = vld [vmem:[%s2927_s4 + $0x40] sm:$0xff] }
 0xb38   : > { %vm1675_vm4 = vmand %vm1672_vm8, %vm3291_vm7 }
 0xb39   : > { %vm1700_vm14 = vmor %vm1693_vm9, %vm1698_vm10  ;;  %vm3293_vm9 = vcmask 31744  }
 0xb3a   : > { %vm1677_vm15 = vmor %vm1670_vm11, %vm1675_vm4  ;;  %v2431_v58 = vsel %vm1700_vm14, 1.0, %v2751_v57  ;;  %vm3324_vm4 = vcmp.gt.s32.totalorder %v1659_v54, 1 }
 0xb3b   : > { %v2429_v59 = vsel %vm1677_vm15, 1.0, %v2751_v57  ;;  %vm3325_vm15 = vcmp.gt.s32.totalorder %v1659_v54, 0 }
 0xb3c   : > { %v1706_v61 = vadd.f32 %v2431_v58, %v2429_v59  ;;  %v1840_v58 = vpop.f32.mrf.mxu2  ;;  %v1788_v59 = vld [vmem:[%s2921_s22] sm:$0x3] }
 0xb3f   : > { %v1710_v60 = vpop.permute.xlu1 %1709 }
 0xb40   : > { %vm1716_vm6 = vcmp.gt.f32.partialorder %v1710_v60, %v3151_v50  ;;  %vm1718_vm2 = vcmp.eq.f32.partialorder %v1710_v60, %v3151_v50  ;;  %v1826_v60 = vpop.f32.mrf.mxu1 }
 0xb41   : > { %vm1721_vm8 = vmand %vm1718_vm2, %vm3294_vm3 }
 0xb42   : > { %vm1723_vm7 = vmor %vm1716_vm6, %vm1721_vm8  ;;  %vm1740_vm6 = vcmp.gt.f32.partialorder %v1737_v7, %v3156_v12 }
 0xb43   : > { %v2433_v62 = vsel %vm1723_vm7, 1.0, %v2751_v57  ;;  %vm1745_vm8 = vmand %vm1742_vm13, %vm1743_vm12  ;;  %vm3327_vm12 = vcmask 31744  }
 0xb44   : > { %v1729_v63 = vadd.f32 %v2433_v62, %v1706_v61  ;;  %v1791_v61 = vperm.slane %v1788_v59, 1  ;;  %v1842_v62 = vpop.f32.mrf.mxu2 }
 0xb46   : > { %v1752_v1 = vadd.f32 %v2435_v0, %v1729_v63  ;;  %v1841_v0 = vadd.f32 %v1840_v58, %v1791_v61  ;;  %v2627_v58 = vld [vmem:[%s809_s0] ss:$0 sm:$0xff] }
 0xb48   : > { %v1668_v2 = vpop.permute.xlu1 %1667  ;;  %vm3292_vm10 = vcmp.lt.f32.partialorder %v1752_v1, 2.0 }
 0xb49   : > { %v1756_v3 = vsel %vm3292_vm10, %v3151_v50, -1e+30  ;;  %vm1673_vm2 = vcmp.eq.f32.partialorder %v1668_v2, %v3156_v12  ;;  %vm1671_vm14 = vcmp.gt.f32.partialorder %v1668_v2, %v3156_v12  ;;  %v1790_v2 = vperm.slane %v1788_v59, 0 }
 0xb4a   : > { %v1759_v4 = vsel %vm3293_vm9, %v1756_v3, -inf  ;;  %vm1676_vm0 = vmand %vm1673_vm2, %vm3325_vm15  ;;  %v1828_v3 = vpop.f32.mrf.mxu1 }
 0xb4b   : > { %1760 = vmax.xlane.f32.xlu1 %v1759_v4  ;;  %vm1678_vm10 = vmor %vm1671_vm14, %vm1676_vm0 }
 0xb4c   : > { %vm1747_vm9 = vmor %vm1740_vm6, %vm1745_vm8  ;;  %v2430_v10 = vsel %vm1678_vm10, 1.0, %v2751_v57  ;;  %vm3328_vm10 = vcmp.lt.f32.partialorder %v1752_v1, 2.0  ;;  %v1843_v1 = vadd.f32 %v1842_v62, %v1791_v61 }
 0xb4d   : > { %v2436_v16 = vsel %vm1747_vm9, 1.0, %v2751_v57 }
 0xb4e   : > { %v1848_v7 = vmax.f32 %v1843_v1, 0.0 }
 0xb51   : > { %v1691_v5 = vpop.permute.xlu1 %1690 }
 0xb52   : > { %vm1696_vm11 = vcmp.eq.f32.partialorder %v1691_v5, %v3156_v12  ;;  %vm1694_vm7 = vcmp.gt.f32.partialorder %v1691_v5, %v3156_v12  ;;  %v1846_v5 = vmax.f32 %v1841_v0, 0.0 }
 0xb53   : > { %vm1699_vm5 = vmand %vm1696_vm11, %vm3324_vm4  ;;  %vm3326_vm11 = vcmp.gt.s32.totalorder %v1659_v54, 2  ;;  %v2553_v54 = vld [vmem:[%s2927_s4 + $0x48] sm:$0xff] }
 0xb54   : > { %vm1701_vm1 = vmor %vm1694_vm7, %vm1699_vm5  ;;  %vm3332_vm5 = vcmask 1043456  }
 0xb55   : > { %v2432_v8 = vsel %vm1701_vm1, 1.0, %v2751_v57  ;;  %2461 = vmatpush.msk.msrb.mxu1 %vm3332_vm5, %v1948_v35  ;;  %vm3333_vm13 = vmmov %vm3332_vm5 }
 0xb56   : > { %v1707_v11 = vadd.f32 %v2432_v8, %v2430_v10  ;;  %2455 = vmatpush.msk.msrb.mxu3 %vm3333_vm13, %v1852_v20  ;;  %vm3334_vm14 = vmmov %vm3332_vm5  ;;  %v1829_v10 = vadd.f32 %v1828_v3, %v1790_v2 }
 0xb57   : > { %2458 = vmatpush.msk.msrb.mxu0 %vm3334_vm14, %v1853_v6 }
 0xb58   : > { %2085 = vmatpush.bf16.msra.mxu3 %v2559_v44 }
 0xb5a   : > { %v1714_v9 = vpop.permute.xlu1 %1713 }
 0xb5b   : > { %vm1717_vm3 = vcmp.gt.f32.partialorder %v1714_v9, %v3156_v12  ;;  %vm1719_vm4 = vcmp.eq.f32.partialorder %v1714_v9, %v3156_v12  ;;  %v1827_v9 = vadd.f32 %v1826_v60, %v1790_v2  ;;  %v2628_v60 = vld [vmem:[%s812_s17] ss:$0 sm:$0xff] }
 0xb5c   : > { %vm1722_vm2 = vmand %vm1719_vm4, %vm3326_vm11  ;;  %2086 = vmatpush.bf16.msra.mxu3 %v2558_v45 }
 0xb5d   : > { %vm1724_vm15 = vmor %vm1717_vm3, %vm1722_vm2  ;;  %vm3341_vm2 = vcmask 261120  }
 0xb5e   : > { %v2434_v14 = vsel %vm1724_vm15, 1.0, %v2751_v57  ;;  %vm3329_vm3 = vmmov %vm3327_vm12  ;;  %v2544_v57 = vld [vmem:[%s2927_s4] sm:$0xff] }
 0xb5f   : > { %v1730_v15 = vadd.f32 %v2434_v14, %v1707_v11  ;;  %vm3330_vm9 = vmmov %vm3329_vm3 }
 0xb60   : > { %vm3335_vm0 = vmmov %vm3329_vm3  ;;  %2087 = vmatpush.bf16.msra.mxu3 %v2557_v47 }
 0xb61   : > { %v1753_v17 = vadd.f32 %v2436_v16, %v1730_v15  ;;  %vm3336_vm1 = vmmov %vm3335_vm0  ;;  %v1845_v16 = vmax.f32 %v1827_v9, 0.0 }
 0xb62   : > { %vm3337_vm6 = vmmov %vm3335_vm0 }
 0xb63   : > { %vm1755_vm7 = vcmp.lt.f32.partialorder %v1753_v17, 2.0  ;;  %vm3338_vm8 = vmmov %vm3335_vm0  ;;  %v1847_v17 = vmax.f32 %v1829_v10, 0.0 }
 0xb64   : > { %v1757_v18 = vsel %vm1755_vm7, %v3156_v12, -1e+30  ;;  %vm3339_vm4 = vmmov %vm3335_vm0  ;;  %2088 = vmatpush.bf16.msra.mxu3 %v2556_v49 }
 0xb65   : > { %v1762_v19 = vsel %vm3327_vm12, %v1757_v18, -inf  ;;  %vm3340_vm11 = vmmov %vm3335_vm0 }
 0xb66   : > { %1763 = vmax.xlane.f32.xlu2 %v1762_v19  ;;  %vm3342_vm15 = vmmov %vm3341_vm2 }
 0xb67   : > { %vm3344_vm12 = vmmov %vm3341_vm2 }
 0xb68   : > { %2089 = vmatpush.bf16.msra.mxu3 %v2555_v24  ;;  %vm3345_vm14 = vmmov %vm3341_vm2 }
 0xb6c   : > { %2090 = vmatpush.bf16.msra.mxu3 %v2554_v52 }
 0xb70   : > { %2091 = vmatpush.bf16.msra.mxu3 %v2553_v54 }
 0xb74   : > { %2092 = vmatpush.bf16.msra.mxu3 %v2552_v55 }
 0xbbe   : > { %v1761_v21 = vpop.xlane.xlu1 %1760 }
 0xbbf   : > { %v1765_v23 = vsub.f32 %v3151_v50, %v1761_v21  ;;  %v2549_v50 = vld [vmem:[%s2927_s4 + $0x28] sm:$0xff] }
 0xbc0   : > { %2073 = vmatpush.bf16.msra.mxu2 %v2549_v50 }
 0xbc1   : > { %v1767_v26 = vmul.f32 1.442695, %v1765_v23 }
 0xbc3   : > { %2667 = vpow2.f32 %v1767_v26 }
 0xbc9   : > { %v2668_v25 = vpop.eup %2667 }
 0xbca   : > { %v1771_v27 = vsel %vm3328_vm10, %v2668_v25, 0.0 }
 0xbcb   : > { %v1773_v22 = vsel %vm3329_vm3, %v1771_v27, 0.0 }
 0xbcc   : > { %1774 = vadd.xlane.f32.xlu0 %v1773_v22 }
 0xbd9   : > { %v1764_v28 = vpop.xlane.xlu2 %1763 }
 0xbda   : > { %v1766_v29 = vsub.f32 %v3156_v12, %v1764_v28  ;;  %v2548_v12 = vld [vmem:[%s2927_s4 + $0x20] sm:$0xff] }
 0xbdb   : > { %2074 = vmatpush.bf16.msra.mxu2 %v2548_v12 }
 0xbdc   : > { %v1769_v30 = vmul.f32 1.442695, %v1766_v29 }
 0xbde   : > { %2669 = vpow2.f32 %v1769_v30 }
 0xbdf   : > { %2075 = vmatpush.bf16.msra.mxu2 %v2547_v53 }
 0xbe3   : > { %2076 = vmatpush.bf16.msra.mxu2 %v2546_v13 }
 0xbe4   : > { %v2670_v31 = vpop.eup %2669 }
 0xbe5   : > { %v1772_v32 = vsel %vm1755_vm7, %v2670_v31, 0.0  ;;  %vm3343_vm7 = vmmov %vm3341_vm2 }
 0xbe6   : > { %v1776_v33 = vsel %vm3330_vm9, %v1772_v32, 0.0 }
 0xbe7   : > { %1777 = vadd.xlane.f32.xlu1 %v1776_v33  ;;  %2077 = vmatpush.bf16.msra.mxu2 %v2545_v56 }
 0xbeb   : > { %2078 = vmatpush.bf16.msra.mxu2 %v2544_v57 }
 0xc3f   : > { %v1775_v36 = vpop.xlane.xlu0 %1774 }
 0xc40   : > { %2671 = vrcp.f32 %v1775_v36 }
 0xc46   : > { %v2672_v37 = vpop.eup %2671 }
 0xc47   : > { %v1781_v39 = vmul.f32 %v2672_v37, %v1771_v27 }
 0xc49   : > { %2456 = vmatmul.msk.f32.vlgmr.msrb.gmra.mxu3 %vm3335_vm0, %v1781_v39  ;;  %2459 = vmatmul.msk.f32.vlgmr.msrb.gmra.mxu0 %vm3336_vm1, %v1781_v39  ;;  %vm3346_vm1 = vmmov %vm3341_vm2 }
 0xc4a   : > { %2462 = vmatmul.msk.f32.vlgmr.msrb.gmra.mxu1 %vm3337_vm6, %v1781_v39 }
 0xc5a   : > { %v1778_v40 = vpop.xlane.xlu1 %1777 }
 0xc5b   : > { %2673 = vrcp.f32 %v1778_v40 }
 0xc61   : > { %v2674_v41 = vpop.eup %2673 }
 0xc62   : > { %v1782_v42 = vmul.f32 %v2674_v41, %v1772_v32 }
 0xc64   : > { %2457 = vmatmul.msk.f32.gmra.mxu3 %vm3338_vm8, %v1782_v42  ;;  %2460 = vmatmul.msk.f32.gmra.mxu0 %vm3339_vm4, %v1782_v42 }
 0xc65   : > { %2463 = vmatmul.msk.f32.gmra.mxu1 %vm3340_vm11, %v1782_v42 }
 0xcc6   : > { %v1904_v63 = vpop.f32.mrf.mxu0 }
 0xcc7   : > { %v1911_v11 = vmul.f32 %v1904_v63, %v1846_v5  ;;  %v1969_v26 = vpop.f32.mrf.mxu1 }
 0xccc   : > { %v1881_v4 = vpop.f32.mrf.mxu3 }
 0xccd   : > { %v1910_v19 = vmul.f32 %v1881_v4, %v1845_v16 }
 0xce1   : > { %v1907_v8 = vpop.f32.mrf.mxu0 }
 0xce2   : > { %v1913_v14 = vmul.f32 %v1907_v8, %v1848_v7  ;;  %v1972_v31 = vpop.f32.mrf.mxu1 }
 0xce4   : > { %v1915_v15 = vpack.c.bf16 %v1913_v14, %v1911_v11 }
 0xce6   : > { %2093 = vmatmul.bf16.vlgmr.msra.gmra.mxu3 %v1915_v15 }
 0xce7   : > { %v1884_v18 = vpop.f32.mrf.mxu3 }
 0xce8   : > { %v1912_v21 = vmul.f32 %v1884_v18, %v1847_v17 }
 0xcea   : > { %v1914_v23 = vpack.c.bf16 %v1912_v21, %v1910_v19 }
 0xcec   : > { %2079 = vmatmul.bf16.vlgmr.msra.gmra.mxu2 %v1914_v23 }
 0xd69   : > { %v2094_v25 = vpop.f32.mrf.mxu3 }
 0xd6f   : > { %v2080_v27 = vpop.f32.mrf.mxu2 }
 0xd70   : > { %v2081_v22 = vadd.f32 %v2080_v27, %v1969_v26 }
 0xd71   : > { %v2096_v34 = vpop.f32.mrf.mxu3 }
 0xd72   : > { %v2095_v28 = vadd.f32 %v2094_v25, %v2081_v22 }
 0xd74   : > { %v2099_v29 = vadd.f32 %v2095_v28, %v3133_v38 }
 0xd76   : > { %v2103_v30 = vsel %vm3341_vm2, %v2099_v29, 0.0 }
 0xd77   : > { %v2082_v32 = vpop.f32.mrf.mxu2  ;;  %2104 = vadd.xlane.f32.xlu2 %v2103_v30 }
 0xd78   : > { %v2083_v33 = vadd.f32 %v2082_v32, %v1972_v31 }
 0xd7a   : > { %v2097_v35 = vadd.f32 %v2096_v34, %v2083_v33 }
 0xd7c   : > { %v2100_v20 = vadd.f32 %v2097_v35, %v3138_v43 }
 0xd7e   : > { %v2106_v6 = vsel %vm3342_vm15, %v2100_v20, 0.0 }
 0xd7f   : > { %2107 = vadd.xlane.f32.xlu0 %v2106_v6 }
 0xdea   : > { %v2105_v36 = vpop.xlane.xlu2 %2104 }
 0xdeb   : > { %v2109_v37 = vmul.f32 %v2105_v36, %v3099_v51 }
 0xded   : > { %v2111_v39 = vsub.f32 %v2099_v29, %v2109_v37 }
 0xdef   : > { %v2113_v40 = vmul.f32 %v2111_v39, %v2111_v39 }
 0xdf1   : > { %v2115_v38 = vsel %vm3343_vm7, %v2113_v40, 0.0 }
 0xdf2   : > { %v2108_v41 = vpop.xlane.xlu0 %2107  ;;  %2116 = vadd.xlane.f32.xlu1 %v2115_v38 }
 0xdf3   : > { %v2110_v42 = vmul.f32 %v2108_v41, %v3099_v51 }
 0xdf5   : > { %v2112_v44 = vsub.f32 %v2100_v20, %v2110_v42 }
 0xdf7   : > { %v2114_v45 = vmul.f32 %v2112_v44, %v2112_v44 }
 0xdf9   : > { %v2118_v46 = vsel %vm3344_vm12, %v2114_v45, 0.0 }
 0xdfa   : > { %2119 = vadd.xlane.f32.xlu2 %v2118_v46 }
 0xe65   : > { %v2117_v43 = vpop.xlane.xlu1 %2116 }
 0xe66   : > { %v2121_v47 = vmul.f32 %v2117_v43, %v3099_v51 }
 0xe68   : > { %v2123_v48 = vadd.f32 1e-05, %v2121_v47 }
 0xe6a   : > { %2675 = vrsqrt.f32 %v2123_v48  ;;  %vm2131_vm3 = vweird.f32 %v2123_v48 }
 0xe6d   : > { %v2120_v49 = vpop.xlane.xlu2 %2119 }
 0xe6e   : > { %v2122_v50 = vmul.f32 %v2120_v49, %v3099_v51 }
 0xe70   : > { %v2676_v24 = vpop.eup %2675  ;;  %v2124_v12 = vadd.f32 1e-05, %v2122_v50 }
 0xe71   : > { %v2126_v52 = vmul.f32 %v2676_v24, %v2123_v48  ;;  %vm2132_vm10 = vweird.f32 %v2676_v24 }
 0xe72   : > { %2677 = vrsqrt.f32 %v2124_v12  ;;  %vm2133_vm9 = vmor %vm2131_vm3, %vm2132_vm10  ;;  %vm2141_vm13 = vweird.f32 %v2124_v12 }
 0xe73   : > { %v2127_v53 = vmul.f32 %v2676_v24, %v2126_v52 }
 0xe75   : > { %v2128_v54 = vmul.f32 0.5, %v2127_v53 }
 0xe77   : > { %v2129_v13 = vsub.f32 1.5, %v2128_v54 }
 0xe78   : > { %v2678_v55 = vpop.eup %2677 }
 0xe79   : > { %v2130_v56 = vmul.f32 %v2676_v24, %v2129_v13  ;;  %v2136_v57 = vmul.f32 %v2678_v55, %v2124_v12  ;;  %vm2142_vm5 = vweird.f32 %v2678_v55 }
 0xe7a   : > { %vm2143_vm0 = vmor %vm2141_vm13, %vm2142_vm5 }
 0xe7b   : > { %v2134_v51 = vsel %vm2133_vm9, %v2676_v24, %v2130_v56  ;;  %v2137_v59 = vmul.f32 %v2678_v55, %v2136_v57 }
 0xe7c   : > { %v2145_v61 = vmul.f32 %v2134_v51, %v2111_v39 }
 0xe7d   : > { %v2138_v62 = vmul.f32 0.5, %v2137_v59 }
 0xe7e   : > { %v2150_v63 = vmul.f32 %v2627_v58, %v2145_v61 }
 0xe7f   : > { %v2139_v0 = vsub.f32 1.5, %v2138_v62 }
 0xe80   : > { %v2155_v1 = vadd.f32 %v2628_v60, %v2150_v63 }
 0xe81   : > { %v2140_v2 = vmul.f32 %v2678_v55, %v2139_v0 }
 0xe82   : > { %2157 = vst.msk [vmem:[#allocation2] sm:$0xff] %vm3345_vm14, %v2155_v1 }
 0xe83   : > { %v2144_v3 = vsel %vm2143_vm0, %v2678_v55, %v2140_v2 }
 0xe84   : > { %v2146_v4 = vmul.f32 %v2144_v3, %v2112_v44 }
 0xe86   : > { %v2151_v5 = vmul.f32 %v2627_v58, %v2146_v4  ;;  %2162 = sbr.rel (%p2528_p6) target bundleno = 3726 (0xe8e), region = 100 }
 0xe88   : > { %v2156_v7 = vadd.f32 %v2628_v60, %v2151_v5 }
 0xe8a   : > { %2158 = vst.msk [vmem:[#allocation2 + $0x8] sm:$0xff] %vm3346_vm1, %v2156_v7 }
 0xe8b   : > { %vm2163_vm6 = vcmask 261127  }
 0xe8c   : > { %2164 = vst.msk [vmem:[#allocation3 - $0x7] sm:$0x80] %vm2163_vm6, %v2155_v1 }
 0xe8d   : > { %2165 = vst.msk [vmem:[#allocation3 - $0x6] sm:$0x80] %vm2163_vm6, %v2156_v7 }
 0xe8e PF: > { %s3347_s19 = sld [smem:[#allocation7_spill]]  ;;  %s2752_s30 = smov [#allocation3]  }
 0xe8f   : > { %s3349_s21 = sld [smem:[#allocation19_spill]]  ;;  %s2173_s25 = sshll.u32 %s2752_s30, 4  ;;  %s2174_s25 = int_to_ptr.vmem [resolvable:$true] %s2173_s25 }
 0xe90   : > { %s2753_s3 = smov 16   ;;  %s2754_s1 = smov 1  }
 0xe94   : > { %s3348_s0 = sadd.s32 4294967295, %s3347_s19  }
 0xe95   : > { %p2568_p7 = scmp.eq.s32.totalorder %s3348_s0, 1  ;;  %s2175_s18 = sshll.u32 %s3349_s21, 4  ;;  %s2176_s18 = int_to_ptr.hbm [resolvable:$true] %s2175_s18 }
 0xe97   : > { %2565 = dma.vmem_to_hbm [thread:$0]  (%p2568_p7), %s2174_s25, 32, %s2176_s18, [#allocation4], %s2753_s3, %s2753_s3, %s2754_s1  }
 0xe98   : > { %2720 = dma.done.wait (%p2568_p7), [#allocation4], 32  }
 0xe99   : > { %2722 = vsyncadd (%p2568_p7), [#allocation4], 4294967264 }
 0xe9a PF: > { %s3350_s27 = sld [smem:[#allocation7_spill]] }
 0xe9b   : > { %s3352_s28 = sld [smem:[#allocation8_spill]] }
 0xea0   : > { %s29_s29 = sadd.s32 1, %s3350_s27   ;;  %s3351_s27 = sld [smem:[#allocation6_spill]] }
 0xea1   : > { %p26_p8 = scmp.ge.s32.totalorder %s29_s29, 4  }
 0xea3   :  { %28 = sbr.rel (!%p26_p8) target bundleno = 14 (0xe), region = 170 }
 0xea8   :  { %2192 = vsyncpa [#allocation4], 1 }
 0xea9   :  { %2194 = vsyncpa [#allocation4 + $0x1], 1 }

</bundles_post_ra>
